<compile_context>
chip_gen: v5e
topology: v5e:2x2
jax: 0.10.0
libtpu: 0.0.40
codegen_flags: <defaults>
</compile_context>

<pallas_src>
import jax
import jax.numpy as jnp
from jax.experimental import pallas as pl
from jax.experimental.pallas import tpu as pltpu


# Original (PyTorch) dims and their 128-padded counterparts.
ORIG_DIMS = [(784, 480), (480, 240), (240, 120), (120, 10)]
PAD_DIMS = [(896, 512), (512, 256), (256, 128), (128, 128)]
D_IN = 784          # original input features
D_IN_PAD = 896      # 7 * 128  (lane-dense x / w1-K)
OUT = 10
OUT_PAD = 128       # lane minimum
MAX_TM = 512        # keeps footprint < v5e's 16 MiB default scoped-VMEM limit


def _round_up(n, m):
    return ((n + m - 1) // m) * m


def _choose_tm(batch):
    """Batch tile: single tile for tiny batches, otherwise >= 2 tiles (v7x
    megacore) with rows growing toward MAX_TM (pipeline-overhead amortization)."""
    b8 = max(8, _round_up(batch, 8))
    if b8 < 128:
        return b8
    half = _round_up((b8 + 1) // 2, 8)
    return min(MAX_TM, half)


def mlp_kernel(x_ref,
               w1_ref, b1_ref,
               w2_ref, b2_ref,
               w3_ref, b3_ref,
               w4_ref, b4_ref,
               o_ref):
    # x may already be bf16 (preferred on v6e); astype is a no-op in that case.
    x = x_ref[...].astype(jnp.bfloat16)          # (TM, 896)

    # fc1 + relu  (bf16 operands -> MXU, f32 accumulate / bias / relu)
    h = jnp.dot(x, w1_ref[...],
                preferred_element_type=jnp.float32) + b1_ref[...]
    h = jnp.maximum(h, 0.0)

    # fc2 + relu
    h = jnp.dot(h.astype(jnp.bfloat16), w2_ref[...],
                preferred_element_type=jnp.float32) + b2_ref[...]
    h = jnp.maximum(h, 0.0)

    # dropout(p=0.2): identity in eval/inference mode
    # TODO(synk): training-mode dropout would use pltpu.prng_seed + prng_random_bits

    # fc3 + relu
    h = jnp.dot(h.astype(jnp.bfloat16), w3_ref[...],
                preferred_element_type=jnp.float32) + b3_ref[...]
    h = jnp.maximum(h, 0.0)

    # fc4 (logits, no activation); padded logit columns are exactly 0
    o_ref[...] = (jnp.dot(h.astype(jnp.bfloat16), w4_ref[...],
                          preferred_element_type=jnp.float32)
                  + b4_ref[...]).astype(o_ref.dtype)


def medium_model_forward(x, params, out_dtype=jnp.float32):
    """x: (B, 784) or (B, 896) in f32 or bf16.  params: padded, pre-transposed
    bf16 weights + f32 biases (see init_params).  Returns (B, 10) logits.

    For best HBM efficiency at large B, pass x already 896-wide (zero-padded)
    and in bf16 — i.e. fuse the pad/cast into the upstream producer instead of
    letting this wrapper do it as a standalone XLA op.
    """
    B = x.shape[0]
    if x.shape[1] == D_IN:
        # Demo convenience; production callers should supply 896-wide input.
        x = jnp.pad(x, ((0, 0), (0, D_IN_PAD - D_IN)))
    assert x.shape[1] == D_IN_PAD

    w1, b1 = params["w1"], params["b1"]
    w2, b2 = params["w2"], params["b2"]
    w3, b3 = params["w3"], params["b3"]
    w4, b4 = params["w4"], params["b4"]

    TM = _choose_tm(B)
    grid = (pl.cdiv(B, TM),)   # ragged last tile is masked; no batch padding

    x_bytes = jnp.dtype(x.dtype).itemsize
    o_bytes = jnp.dtype(out_dtype).itemsize

    tiled = lambda shape: pl.BlockSpec(shape, lambda i: (i, 0))       # x / out
    resident = lambda shape: pl.BlockSpec(shape, lambda i: (0, 0))    # weights / biases

    flops = 2 * B * sum(m * n for m, n in PAD_DIMS)
    bytes_accessed = (B * D_IN_PAD * x_bytes + B * OUT_PAD * o_bytes
                      + sum(m * n * 2 for m, n in PAD_DIMS)           # bf16 weights
                      + sum(n * 4 for _, n in PAD_DIMS))              # f32 biases
    cost = pl.CostEstimate(flops=flops, transcendentals=0,
                           bytes_accessed=bytes_accessed)

    out = pl.pallas_call(
        mlp_kernel,
        out_shape=jax.ShapeDtypeStruct((B, OUT_PAD), out_dtype),
        grid=grid,
        in_specs=[
            tiled((TM, D_IN_PAD)),
            resident(w1.shape), resident(b1.shape),
            resident(w2.shape), resident(b2.shape),
            resident(w3.shape), resident(b3.shape),
            resident(w4.shape), resident(b4.shape),
        ],
        out_specs=tiled((TM, OUT_PAD)),
        compiler_params=pltpu.CompilerParams(
            dimension_semantics=("parallel",)),
        cost_estimate=cost,
    )(x, w1, b1, w2, b2, w3, b3, w4, b4)

    return out[:, :OUT]


def init_params(key):
    """Torch-like Linear init (uniform +/- 1/sqrt(fan_in)) at the original dims,
    then zero-padded to the 128-multiple padded dims.  Weights are (in, out)
    bf16; biases f32.  Zero padding keeps results exact."""
    params = {}
    for i, ((fi, fo), (pi, po)) in enumerate(zip(ORIG_DIMS, PAD_DIMS), start=1):
        key, kw, kb = jax.random.split(key, 3)
        bound = 1.0 / jnp.sqrt(jnp.float32(fi))
        w = jax.random.uniform(kw, (fi, fo), jnp.float32, minval=-bound, maxval=bound)
        b = jax.random.uniform(kb, (1, fo), jnp.float32, minval=-bound, maxval=bound)
        w = jnp.pad(w, ((0, pi - fi), (0, po - fo)))
        b = jnp.pad(b, ((0, 0), (0, po - fo)))
        params[f"w{i}"] = w.astype(jnp.bfloat16)
        params[f"b{i}"] = b  # f32
    return params


def reference_forward(x, params):
    """Pure-JAX reference using the same bf16-weight / f32-accumulate recipe."""
    if x.shape[1] == D_IN:
        x = jnp.pad(x, ((0, 0), (0, D_IN_PAD - D_IN)))
    h = x
    for i in range(1, 5):
        w, b = params[f"w{i}"], params[f"b{i}"]
        h = jnp.dot(h.astype(jnp.bfloat16), w,
                    preferred_element_type=jnp.float32) + b
        if i < 4:
            h = jnp.maximum(h, 0.0)
    return h[:, :OUT]


if __name__ == "__main__":
    key = jax.random.PRNGKey(0)
    kp, kx, kx2 = jax.random.split(key, 3)

    params = init_params(kp)

    # Small deterministic example consistent with the module: (B=8, 784) f32.
    B = 8
    x = jax.random.normal(kx, (B, D_IN), dtype=jnp.float32)

    out = medium_model_forward(x, params)
    out = jax.block_until_ready(out)

    ref = reference_forward(x, params)
    assert out.shape == (B, OUT)
    assert jnp.allclose(out, ref, atol=2e-2, rtol=2e-2), "mismatch vs reference (B=8)"

    # Multi-tile grid sanity check (2 tiles -> exercises the parallel batch axis).
    B2 = 272
    x2 = jax.random.normal(kx2, (B2, D_IN), dtype=jnp.float32)
    out2 = jax.block_until_ready(medium_model_forward(x2, params))
    ref2 = reference_forward(x2, params)
    assert out2.shape == (B2, OUT)
    assert jnp.allclose(out2, ref2, atol=2e-2, rtol=2e-2), "mismatch vs reference (B=272)"

    print("KERNEL_OK")
</pallas_src>

<mosaic_0001>
module attributes {stable_mosaic.version = 11 : i64} {
  func.func @mlp_kernel(%arg0: i32, %arg1: memref<8x896xf32, #tpu.memory_space<vmem>>, %arg2: memref<896x512xbf16, #tpu.memory_space<vmem>>, %arg3: memref<1x512xf32, #tpu.memory_space<vmem>>, %arg4: memref<512x256xbf16, #tpu.memory_space<vmem>>, %arg5: memref<1x256xf32, #tpu.memory_space<vmem>>, %arg6: memref<256x128xbf16, #tpu.memory_space<vmem>>, %arg7: memref<1x128xf32, #tpu.memory_space<vmem>>, %arg8: memref<128x128xbf16, #tpu.memory_space<vmem>>, %arg9: memref<1x128xf32, #tpu.memory_space<vmem>>, %arg10: memref<8x128xf32, #tpu.memory_space<vmem>>) attributes {dimension_semantics = [#tpu.dimension_semantics<parallel>], iteration_bounds = array<i64: 1>, scalar_prefetch = 0 : i64, scratch_operands = 0 : i64, tpu.core_type = #tpu.core_type<tc>, window_params = [{transform_indices = @transform_0, window_bounds = array<i64: 8, 896>}, {pipeline_mode = #tpu.pipeline_mode<synchronous>, transform_indices = @transform_1, window_bounds = array<i64: 896, 512>}, {pipeline_mode = #tpu.pipeline_mode<synchronous>, transform_indices = @transform_2, window_bounds = array<i64: 1, 512>}, {pipeline_mode = #tpu.pipeline_mode<synchronous>, transform_indices = @transform_3, window_bounds = array<i64: 512, 256>}, {pipeline_mode = #tpu.pipeline_mode<synchronous>, transform_indices = @transform_4, window_bounds = array<i64: 1, 256>}, {pipeline_mode = #tpu.pipeline_mode<synchronous>, transform_indices = @transform_5, window_bounds = array<i64: 256, 128>}, {pipeline_mode = #tpu.pipeline_mode<synchronous>, transform_indices = @transform_6, window_bounds = array<i64: 1, 128>}, {pipeline_mode = #tpu.pipeline_mode<synchronous>, transform_indices = @transform_7, window_bounds = array<i64: 128, 128>}, {pipeline_mode = #tpu.pipeline_mode<synchronous>, transform_indices = @transform_8, window_bounds = array<i64: 1, 128>}, {transform_indices = @transform_9, window_bounds = array<i64: 8, 128>}]} {
    %c0 = arith.constant 0 : index
    %c0_0 = arith.constant 0 : index
    %0 = vector.load %arg1[%c0, %c0_0] : memref<8x896xf32, #tpu.memory_space<vmem>>, vector<8x896xf32>
    %1 = arith.truncf %0 : vector<8x896xf32> to vector<8x896xbf16>
    %c0_1 = arith.constant 0 : index
    %c0_2 = arith.constant 0 : index
    %2 = vector.load %arg2[%c0_1, %c0_2] : memref<896x512xbf16, #tpu.memory_space<vmem>>, vector<896x512xbf16>
    %cst = arith.constant dense<0.000000e+00> : vector<8x512xf32>
    %3 = tpu.matmul %1, %2, %cst {dimension_numbers = #tpu.dot_dimension_numbers<[1], [0], [0], [1], [0, 0, 1, 1], [], []>} : vector<8x896xbf16>, vector<896x512xbf16>, vector<8x512xf32> -> vector<8x512xf32>
    %c0_3 = arith.constant 0 : index
    %c0_4 = arith.constant 0 : index
    %4 = vector.load %arg3[%c0_3, %c0_4] : memref<1x512xf32, #tpu.memory_space<vmem>>, vector<1x512xf32>
    %5 = vector.broadcast %4 : vector<1x512xf32> to vector<8x512xf32>
    %6 = arith.addf %3, %5 : vector<8x512xf32>
    %cst_5 = arith.constant 0.000000e+00 : f32
    %7 = vector.broadcast %cst_5 : f32 to vector<8x512xf32>
    %8 = arith.maximumf %6, %7 : vector<8x512xf32>
    %9 = arith.truncf %8 : vector<8x512xf32> to vector<8x512xbf16>
    %c0_6 = arith.constant 0 : index
    %c0_7 = arith.constant 0 : index
    %10 = vector.load %arg4[%c0_6, %c0_7] : memref<512x256xbf16, #tpu.memory_space<vmem>>, vector<512x256xbf16>
    %cst_8 = arith.constant dense<0.000000e+00> : vector<8x256xf32>
    %11 = tpu.matmul %9, %10, %cst_8 {dimension_numbers = #tpu.dot_dimension_numbers<[1], [0], [0], [1], [0, 0, 1, 1], [], []>} : vector<8x512xbf16>, vector<512x256xbf16>, vector<8x256xf32> -> vector<8x256xf32>
    %c0_9 = arith.constant 0 : index
    %c0_10 = arith.constant 0 : index
    %12 = vector.load %arg5[%c0_9, %c0_10] : memref<1x256xf32, #tpu.memory_space<vmem>>, vector<1x256xf32>
    %13 = vector.broadcast %12 : vector<1x256xf32> to vector<8x256xf32>
    %14 = arith.addf %11, %13 : vector<8x256xf32>
    %cst_11 = arith.constant 0.000000e+00 : f32
    %15 = vector.broadcast %cst_11 : f32 to vector<8x256xf32>
    %16 = arith.maximumf %14, %15 : vector<8x256xf32>
    %17 = arith.truncf %16 : vector<8x256xf32> to vector<8x256xbf16>
    %c0_12 = arith.constant 0 : index
    %c0_13 = arith.constant 0 : index
    %18 = vector.load %arg6[%c0_12, %c0_13] : memref<256x128xbf16, #tpu.memory_space<vmem>>, vector<256x128xbf16>
    %cst_14 = arith.constant dense<0.000000e+00> : vector<8x128xf32>
    %19 = tpu.matmul %17, %18, %cst_14 {dimension_numbers = #tpu.dot_dimension_numbers<[1], [0], [0], [1], [0, 0, 1, 1], [], []>} : vector<8x256xbf16>, vector<256x128xbf16>, vector<8x128xf32> -> vector<8x128xf32>
    %c0_15 = arith.constant 0 : index
    %c0_16 = arith.constant 0 : index
    %20 = vector.load %arg7[%c0_15, %c0_16] : memref<1x128xf32, #tpu.memory_space<vmem>>, vector<1x128xf32>
    %21 = vector.broadcast %20 : vector<1x128xf32> to vector<8x128xf32>
    %22 = arith.addf %19, %21 : vector<8x128xf32>
    %cst_17 = arith.constant 0.000000e+00 : f32
    %23 = vector.broadcast %cst_17 : f32 to vector<8x128xf32>
    %24 = arith.maximumf %22, %23 : vector<8x128xf32>
    %25 = arith.truncf %24 : vector<8x128xf32> to vector<8x128xbf16>
    %c0_18 = arith.constant 0 : index
    %c0_19 = arith.constant 0 : index
    %26 = vector.load %arg8[%c0_18, %c0_19] : memref<128x128xbf16, #tpu.memory_space<vmem>>, vector<128x128xbf16>
    %cst_20 = arith.constant dense<0.000000e+00> : vector<8x128xf32>
    %27 = tpu.matmul %25, %26, %cst_20 {dimension_numbers = #tpu.dot_dimension_numbers<[1], [0], [0], [1], [0, 0, 1, 1], [], []>} : vector<8x128xbf16>, vector<128x128xbf16>, vector<8x128xf32> -> vector<8x128xf32>
    %c0_21 = arith.constant 0 : index
    %c0_22 = arith.constant 0 : index
    %28 = vector.load %arg9[%c0_21, %c0_22] : memref<1x128xf32, #tpu.memory_space<vmem>>, vector<1x128xf32>
    %29 = vector.broadcast %28 : vector<1x128xf32> to vector<8x128xf32>
    %30 = arith.addf %27, %29 : vector<8x128xf32>
    %c0_23 = arith.constant 0 : index
    %c0_24 = arith.constant 0 : index
    %31 = vector.load %arg10[%c0_23, %c0_24] : memref<8x128xf32, #tpu.memory_space<vmem>>, vector<8x128xf32>
    tpu.vector_store %arg10[%c0_23, %c0_24], %30 {strides = array<i32>} : memref<8x128xf32, #tpu.memory_space<vmem>>, vector<8x128xf32>,
    return
  }
  func.func @transform_0(%arg0: i32) -> (i32, i32) {
    %c0_i32 = arith.constant 0 : i32
    %c0_i32_0 = arith.constant 0 : i32
    return %arg0, %c0_i32 : i32, i32
  }
  func.func @transform_1(%arg0: i32) -> (i32, i32) {
    %c0_i32 = arith.constant 0 : i32
    %c0_i32_0 = arith.constant 0 : i32
    %c0_i32_1 = arith.constant 0 : i32
    return %c0_i32, %c0_i32_0 : i32, i32
  }
  func.func @transform_2(%arg0: i32) -> (i32, i32) {
    %c0_i32 = arith.constant 0 : i32
    %c0_i32_0 = arith.constant 0 : i32
    %c0_i32_1 = arith.constant 0 : i32
    return %c0_i32, %c0_i32_0 : i32, i32
  }
  func.func @transform_3(%arg0: i32) -> (i32, i32) {
    %c0_i32 = arith.constant 0 : i32
    %c0_i32_0 = arith.constant 0 : i32
    %c0_i32_1 = arith.constant 0 : i32
    return %c0_i32, %c0_i32_0 : i32, i32
  }
  func.func @transform_4(%arg0: i32) -> (i32, i32) {
    %c0_i32 = arith.constant 0 : i32
    %c0_i32_0 = arith.constant 0 : i32
    %c0_i32_1 = arith.constant 0 : i32
    return %c0_i32, %c0_i32_0 : i32, i32
  }
  func.func @transform_5(%arg0: i32) -> (i32, i32) {
    %c0_i32 = arith.constant 0 : i32
    %c0_i32_0 = arith.constant 0 : i32
    %c0_i32_1 = arith.constant 0 : i32
    return %c0_i32, %c0_i32_0 : i32, i32
  }
  func.func @transform_6(%arg0: i32) -> (i32, i32) {
    %c0_i32 = arith.constant 0 : i32
    %c0_i32_0 = arith.constant 0 : i32
    %c0_i32_1 = arith.constant 0 : i32
    return %c0_i32, %c0_i32_0 : i32, i32
  }
  func.func @transform_7(%arg0: i32) -> (i32, i32) {
    %c0_i32 = arith.constant 0 : i32
    %c0_i32_0 = arith.constant 0 : i32
    %c0_i32_1 = arith.constant 0 : i32
    return %c0_i32, %c0_i32_0 : i32, i32
  }
  func.func @transform_8(%arg0: i32) -> (i32, i32) {
    %c0_i32 = arith.constant 0 : i32
    %c0_i32_0 = arith.constant 0 : i32
    %c0_i32_1 = arith.constant 0 : i32
    return %c0_i32, %c0_i32_0 : i32, i32
  }
  func.func @transform_9(%arg0: i32) -> (i32, i32) {
    %c0_i32 = arith.constant 0 : i32
    %c0_i32_0 = arith.constant 0 : i32
    return %arg0, %c0_i32 : i32, i32
  }
}

</mosaic_0001>

<bundles_post_ra>
// kernel: tpu_custom_call.1
= control target key start
LH: loop header
LB: loop body
LE: loop exit
PB: predicated region body
PF: predicated region fallthrough
CT: control target
= control target key end

     0   :  { %14 = vsyncpa [#allocation3], 0  ;;  %s4557_s0 = inlined_call_operand.hbm [shape: f32[8,896], index: 0, kind: input, shape index: {}]   ;;  %s4558_s1 = inlined_call_operand.hbm [shape: bf16[896,512], index: 1, kind: input, shape index: {}]   ;;  %s4559_s2 = inlined_call_operand.hbm [shape: f32[1,512], index: 2, kind: input, shape index: {}]   ;;  %s4560_s3 = inlined_call_operand.hbm [shape: bf16[512,256], index: 3, kind: input, shape index: {}]   ;;  %s4561_s4 = inlined_call_operand.vmem [shape: f32[1,256], index: 4, kind: input, shape index: {}]   ;;  %s4562_s5 = inlined_call_operand.hbm [shape: bf16[256,128], index: 5, kind: input, shape index: {}]   ;;  %s4563_s6 = inlined_call_operand.vmem [shape: f32[1,128], index: 6, kind: input, shape index: {}]   ;;  %s4564_s7 = inlined_call_operand.hbm [shape: bf16[128,128], index: 7, kind: input, shape index: {}]   ;;  %s4565_s8 = inlined_call_operand.vmem [shape: f32[1,128], index: 8, kind: input, shape index: {}]   ;;  %s4566_s9 = inlined_call_operand.hbm [shape: f32[8,128], index: 9, kind: output, shape index: {}]  }
   0x1   :  { %15 = vsyncpa [#allocation6], 0 }
   0x2   :  { %16 = vsyncpa [#allocation9], 0 }
   0x3   :  { %17 = vsyncpa [#allocation12], 0  ;;  %s34_s11 = sshll.u32 %s4558_s1, 4  ;;  %s35_s11 = int_to_ptr.hbm [resolvable:$true] %s34_s11 }
   0x4   :  { %18 = vsyncpa [#allocation4], 0  ;;  %s4376_s12 = smov [#allocation5]   ;;  %s58_s16 = sshll.u32 %s4560_s3, 4  ;;  %s59_s16 = int_to_ptr.hbm [resolvable:$true] %s58_s16 }
   0x5   :  { %s36_s13 = sshll.u32 %s4376_s12, 4  ;;  %s4377_s17 = smov 256   ;;  %s37_s13 = int_to_ptr.vmem [resolvable:$true] %s36_s13 }
   0x6   :  { %s4378_s18 = smov 16   ;;  %s4379_s19 = smov [#allocation8]  }
   0x7   :  { %42 = dma.hbm_to_vmem [thread:$0]  %s35_s11, 28672, %s37_s13, [#allocation6], %s4377_s17, %s4377_s17, %s4378_s18  }
   0x8   :  { %s60_s20 = sshll.u32 %s4379_s19, 4  ;;  %s4380_s21 = smov 128   ;;  %s61_s20 = int_to_ptr.vmem [resolvable:$true] %s60_s20 }
   0x9   :  { %s4381_s22 = smov 8   ;;  %s24_s24 = sshll.u32 %s4557_s0, 4  ;;  %s25_s24 = int_to_ptr.hbm [resolvable:$true] %s24_s24 }
   0xa   :  { %66 = dma.hbm_to_vmem [thread:$0]  %s59_s16, 8192, %s61_s20, [#allocation9], %s4380_s21, %s4380_s21, %s4381_s22  }
   0xb   :  { %s4382_s25 = smov [#allocation2]   ;;  %s48_s28 = sshll.u32 %s4559_s2, 4  ;;  %s49_s28 = int_to_ptr.hbm [resolvable:$true] %s48_s28 }
   0xc   :  { %s26_s26 = sshll.u32 %s4382_s25, 4  ;;  %s4383_s29 = smov [#allocation7]   ;;  %s27_s26 = int_to_ptr.vmem [resolvable:$true] %s26_s26 }
   0xd   :  { %29 = dma.hbm_to_vmem [thread:$0]  %s25_s24, 896, %s27_s26, [#allocation3]  }
   0xe   :  { %s50_s30 = sshll.u32 %s4383_s29, 4  ;;  %s73_s12 = sshll.u32 %s4562_s5, 4  ;;  %s51_s30 = int_to_ptr.vmem [resolvable:$true] %s50_s30  ;;  %s74_s12 = int_to_ptr.hbm [resolvable:$true] %s73_s12 }
   0xf   :  { %53 = dma.hbm_to_vmem [thread:$0]  %s49_s28, 64, %s51_s30, [#allocation6]  }
  0x10   :  { %s4384_s0 = smov [#allocation10]   ;;  %s88_s16 = sshll.u32 %s4564_s7, 4  ;;  %s89_s16 = int_to_ptr.hbm [resolvable:$true] %s88_s16 }
  0x11   :  { %s75_s13 = sshll.u32 %s4384_s0, 4  ;;  %s4385_s17 = smov 64   ;;  %s76_s13 = int_to_ptr.vmem [resolvable:$true] %s75_s13 }
  0x12   :  { %s4386_s2 = smov 4   ;;  %s4387_s18 = smov [#allocation11]  }
  0x13   :  { %81 = dma.hbm_to_vmem [thread:$0]  %s74_s12, 2048, %s76_s13, [#allocation9], %s4385_s17, %s4385_s17, %s4386_s2  }
  0x14   :  { %s90_s19 = sshll.u32 %s4387_s18, 4  ;;  %s91_s19 = int_to_ptr.vmem [resolvable:$true] %s90_s19 }
  0x15   :  { %96 = dma.hbm_to_vmem [thread:$0]  %s89_s16, 1024, %s91_s19, [#allocation12], %s4385_s17, %s4385_s17, %s4386_s2  }
  0x16   :  { %4366 = dma.done.wait [#allocation3], 896  }
  0x17   :  { %4367 = vsyncadd [#allocation3], 4294966400 }
  0x18   :  { %4368 = dma.done.wait [#allocation6], 28736  }
  0x19   :  { %4369 = vsyncadd [#allocation6], 4294938560 }
  0x1a   :  { %4370 = dma.done.wait [#allocation9], 10240  }
  0x1b   :  { %4371 = vsyncadd [#allocation9], 4294957056 }
  0x1c   :  { %4372 = dma.done.wait [#allocation12], 1024  }
  0x1d   :  { %4373 = vsyncadd [#allocation12], 4294966272  ;;  %v2737_v0 = vld [vmem:[#allocation5 + $0xe0] sm:$0xf]  ;;  %v3901_v1 = vld [vmem:[#allocation5 + $0xec] sm:$0xf0] }
  0x1e   :  { %v2865_v2 = vld [vmem:[#allocation5 + $0x1e0] sm:$0xf]  ;;  %v2738_v3 = vor.u32 %v3901_v1, %v2737_v0  ;;  %v3933_v4 = vld [vmem:[#allocation5 + $0x1ec] sm:$0xf0]  ;;  %s4388_s1 = smov [#allocation13]   ;;  %s2610_s26 = sshll.u32 %s4566_s9, 4  ;;  %s2611_s26 = int_to_ptr.hbm [resolvable:$true] %s2610_s26 }
  0x1f   :  { %v2993_v5 = vld [vmem:[#allocation5 + $0x2e0] sm:$0xf]  ;;  %v3965_v6 = vld [vmem:[#allocation5 + $0x2ec] sm:$0xf0]  ;;  %v2866_v7 = vor.u32 %v3933_v4, %v2865_v2  ;;  %s2608_s23 = sshll.u32 %s4388_s1, 4  ;;  %s2609_s23 = int_to_ptr.vmem [resolvable:$true] %s2608_s23 }
  0x20   :  { %v2994_v8 = vor.u32 %v3965_v6, %v2993_v5  ;;  %v3121_v9 = vld [vmem:[#allocation5 + $0x3e0] sm:$0xf]  ;;  %v3997_v10 = vld [vmem:[#allocation5 + $0x3ec] sm:$0xf0]  ;;  %1491 = vmatpush.bf16.msra.mxu0 %v2738_v3 }
  0x21   :  { %v2721_v11 = vld [vmem:[#allocation5 + $0xc0] sm:$0xf]  ;;  %v3122_v12 = vor.u32 %v3997_v10, %v3121_v9  ;;  %v3897_v13 = vld [vmem:[#allocation5 + $0xcc] sm:$0xf0]  ;;  %1504 = vmatpush.bf16.msra.mxu1 %v2866_v7 }
  0x22   :  { %v2849_v14 = vld [vmem:[#allocation5 + $0x1c0] sm:$0xf]  ;;  %v3929_v15 = vld [vmem:[#allocation5 + $0x1cc] sm:$0xf0]  ;;  %1517 = vmatpush.bf16.msra.mxu2 %v2994_v8  ;;  %v2722_v16 = vor.u32 %v3897_v13, %v2721_v11 }
  0x23   :  { %v2850_v17 = vor.u32 %v3929_v15, %v2849_v14  ;;  %v2977_v18 = vld [vmem:[#allocation5 + $0x2c0] sm:$0xf]  ;;  %v3961_v19 = vld [vmem:[#allocation5 + $0x2cc] sm:$0xf0]  ;;  %1530 = vmatpush.bf16.msra.mxu3 %v3122_v12 }
  0x24   :  { %v3105_v20 = vld [vmem:[#allocation5 + $0x3c0] sm:$0xf]  ;;  %v2978_v21 = vor.u32 %v3961_v19, %v2977_v18  ;;  %v3993_v22 = vld [vmem:[#allocation5 + $0x3cc] sm:$0xf0]  ;;  %1492 = vmatpush.bf16.msra.mxu0 %v2722_v16 }
  0x25   :  { %v2705_v23 = vld [vmem:[#allocation5 + $0xa0] sm:$0xf]  ;;  %v3893_v24 = vld [vmem:[#allocation5 + $0xac] sm:$0xf0]  ;;  %v3106_v25 = vor.u32 %v3993_v22, %v3105_v20  ;;  %1505 = vmatpush.bf16.msra.mxu1 %v2850_v17 }
  0x26   :  { %v2833_v26 = vld [vmem:[#allocation5 + $0x1a0] sm:$0xf]  ;;  %v3925_v27 = vld [vmem:[#allocation5 + $0x1ac] sm:$0xf0]  ;;  %v2706_v29 = vor.u32 %v3893_v24, %v2705_v23  ;;  %1518 = vmatpush.bf16.msra.mxu2 %v2978_v21 }
  0x27   :  { %v2961_v28 = vld [vmem:[#allocation5 + $0x2a0] sm:$0xf]  ;;  %v3957_v30 = vld [vmem:[#allocation5 + $0x2ac] sm:$0xf0]  ;;  %v2834_v33 = vor.u32 %v3925_v27, %v2833_v26  ;;  %1531 = vmatpush.bf16.msra.mxu3 %v3106_v25 }
  0x28   :  { %v3089_v31 = vld [vmem:[#allocation5 + $0x3a0] sm:$0xf]  ;;  %v3989_v32 = vld [vmem:[#allocation5 + $0x3ac] sm:$0xf0]  ;;  %v2962_v34 = vor.u32 %v3957_v30, %v2961_v28  ;;  %1493 = vmatpush.bf16.msra.mxu0 %v2706_v29 }
  0x29   :  { %v2689_v35 = vld [vmem:[#allocation5 + $0x80] sm:$0xf]  ;;  %v3889_v36 = vld [vmem:[#allocation5 + $0x8c] sm:$0xf0]  ;;  %v3090_v38 = vor.u32 %v3989_v32, %v3089_v31  ;;  %1506 = vmatpush.bf16.msra.mxu1 %v2834_v33 }
  0x2a   :  { %v2817_v37 = vld [vmem:[#allocation5 + $0x180] sm:$0xf]  ;;  %v3921_v39 = vld [vmem:[#allocation5 + $0x18c] sm:$0xf0]  ;;  %v2690_v44 = vor.u32 %v3889_v36, %v2689_v35  ;;  %1519 = vmatpush.bf16.msra.mxu2 %v2962_v34 }
  0x2b   :  { %v2945_v40 = vld [vmem:[#allocation5 + $0x280] sm:$0xf]  ;;  %v3953_v41 = vld [vmem:[#allocation5 + $0x28c] sm:$0xf0]  ;;  %v2818_v45 = vor.u32 %v3921_v39, %v2817_v37  ;;  %1532 = vmatpush.bf16.msra.mxu3 %v3090_v38  ;;  %v3899_v37 = vld [vmem:[#allocation5 + $0xe4] sm:$0xf] }
  0x2c   :  { %v3073_v42 = vld [vmem:[#allocation5 + $0x380] sm:$0xf]  ;;  %v3985_v43 = vld [vmem:[#allocation5 + $0x38c] sm:$0xf0]  ;;  %v2946_v46 = vor.u32 %v3953_v41, %v2945_v40  ;;  %1494 = vmatpush.bf16.msra.mxu0 %v2690_v44  ;;  %v2739_v38 = vld [vmem:[#allocation5 + $0xf0] sm:$0xf0] }
  0x2d   :  { %v2673_v47 = vld [vmem:[#allocation5 + $0x60] sm:$0xf]  ;;  %v3885_v48 = vld [vmem:[#allocation5 + $0x6c] sm:$0xf0]  ;;  %v3074_v50 = vor.u32 %v3985_v43, %v3073_v42  ;;  %1507 = vmatpush.bf16.msra.mxu1 %v2818_v45 }
  0x2e   :  { %v2801_v49 = vld [vmem:[#allocation5 + $0x160] sm:$0xf]  ;;  %v3917_v51 = vld [vmem:[#allocation5 + $0x16c] sm:$0xf0]  ;;  %v2674_v56 = vor.u32 %v3885_v48, %v2673_v47  ;;  %1520 = vmatpush.bf16.msra.mxu2 %v2946_v46  ;;  %v2742_v46 = vor.u32 %v3899_v37, %v2739_v38 }
  0x2f   :  { %v2929_v52 = vld [vmem:[#allocation5 + $0x260] sm:$0xf]  ;;  %v3949_v53 = vld [vmem:[#allocation5 + $0x26c] sm:$0xf0]  ;;  %v2802_v57 = vor.u32 %v3917_v51, %v2801_v49  ;;  %1533 = vmatpush.bf16.msra.mxu3 %v3074_v50  ;;  %v3895_v50 = vld [vmem:[#allocation5 + $0xc4] sm:$0xf] }
  0x30   :  { %v3057_v54 = vld [vmem:[#allocation5 + $0x360] sm:$0xf]  ;;  %v3981_v55 = vld [vmem:[#allocation5 + $0x36c] sm:$0xf0]  ;;  %v2930_v58 = vor.u32 %v3949_v53, %v2929_v52  ;;  %1495 = vmatpush.bf16.msra.mxu0 %v2674_v56  ;;  %v2723_v51 = vld [vmem:[#allocation5 + $0xd0] sm:$0xf0] }
  0x31   :  { %v2657_v59 = vld [vmem:[#allocation5 + $0x40] sm:$0xf]  ;;  %v3881_v60 = vld [vmem:[#allocation5 + $0x4c] sm:$0xf0]  ;;  %v3058_v62 = vor.u32 %v3981_v55, %v3057_v54  ;;  %1508 = vmatpush.bf16.msra.mxu1 %v2802_v57 }
  0x32   :  { %v2785_v61 = vld [vmem:[#allocation5 + $0x140] sm:$0xf]  ;;  %v3913_v63 = vld [vmem:[#allocation5 + $0x14c] sm:$0xf0]  ;;  %v2658_v4 = vor.u32 %v3881_v60, %v2657_v59  ;;  %1521 = vmatpush.bf16.msra.mxu2 %v2930_v58  ;;  %v2726_v59 = vor.u32 %v3895_v50, %v2723_v51 }
  0x33   :  { %v2913_v0 = vld [vmem:[#allocation5 + $0x240] sm:$0xf]  ;;  %v3945_v1 = vld [vmem:[#allocation5 + $0x24c] sm:$0xf0]  ;;  %v2786_v5 = vor.u32 %v3913_v63, %v2785_v61  ;;  %1534 = vmatpush.bf16.msra.mxu3 %v3058_v62  ;;  %v3891_v62 = vld [vmem:[#allocation5 + $0xa4] sm:$0xf] }
  0x34   :  { %v3041_v2 = vld [vmem:[#allocation5 + $0x340] sm:$0xf]  ;;  %v3977_v3 = vld [vmem:[#allocation5 + $0x34c] sm:$0xf0]  ;;  %v2914_v6 = vor.u32 %v3945_v1, %v2913_v0  ;;  %1496 = vmatpush.bf16.msra.mxu0 %v2658_v4  ;;  %v2707_v63 = vld [vmem:[#allocation5 + $0xb0] sm:$0xf0] }
  0x35   :  { %v2641_v7 = vld [vmem:[#allocation5 + $0x20] sm:$0xf]  ;;  %v3877_v8 = vld [vmem:[#allocation5 + $0x2c] sm:$0xf0]  ;;  %v3042_v10 = vor.u32 %v3977_v3, %v3041_v2  ;;  %1509 = vmatpush.bf16.msra.mxu1 %v2786_v5  ;;  %v125_v3 = vld [vmem:[#allocation2 + $0x10] sm:$0xff] }
  0x36   :  { %v2769_v9 = vld [vmem:[#allocation5 + $0x120] sm:$0xf]  ;;  %v3909_v11 = vld [vmem:[#allocation5 + $0x12c] sm:$0xf0]  ;;  %v2642_v16 = vor.u32 %v3877_v8, %v2641_v7  ;;  %1522 = vmatpush.bf16.msra.mxu2 %v2914_v6  ;;  %v123_v4 = vld [vmem:[#allocation2] sm:$0xff]  ;;  %v4457_v8 = vpack.c.bf16 %v125_v3, %v125_v3 }
  0x37   :  { %v2897_v12 = vld [vmem:[#allocation5 + $0x220] sm:$0xf]  ;;  %v3941_v13 = vld [vmem:[#allocation5 + $0x22c] sm:$0xf0]  ;;  %v2770_v19 = vor.u32 %v3909_v11, %v2769_v9  ;;  %1535 = vmatpush.bf16.msra.mxu3 %v3042_v10  ;;  %v4459_v9 = vpack.c.bf16 %v123_v4, %v123_v4  ;;  %v2710_v11 = vor.u32 %v3891_v62, %v2707_v63  ;;  %v2627_v3 = vld [vmem:[#allocation5 + $0x10] sm:$0xf0] }
  0x38   :  { %v3025_v14 = vld [vmem:[#allocation5 + $0x320] sm:$0xf]  ;;  %v3973_v15 = vld [vmem:[#allocation5 + $0x32c] sm:$0xf0]  ;;  %v2898_v20 = vor.u32 %v3941_v13, %v2897_v12  ;;  %1497 = vmatpush.bf16.msra.mxu0 %v2642_v16  ;;  %v3887_v16 = vld [vmem:[#allocation5 + $0x84] sm:$0xf] }
  0x39   :  { %v2625_v17 = vld [vmem:[#allocation5] sm:$0xf]  ;;  %v3873_v18 = vld [vmem:[#allocation5 + $0xc] sm:$0xf0]  ;;  %v3026_v24 = vor.u32 %v3973_v15, %v3025_v14  ;;  %1510 = vmatpush.bf16.msra.mxu1 %v2770_v19  ;;  %v3931_v4 = vld [vmem:[#allocation5 + $0x1e4] sm:$0xf] }
  0x3a   :  { %v2753_v21 = vld [vmem:[#allocation5 + $0x100] sm:$0xf]  ;;  %v3905_v22 = vld [vmem:[#allocation5 + $0x10c] sm:$0xf0]  ;;  %v2626_v31 = vor.u32 %v3873_v18, %v2625_v17  ;;  %1523 = vmatpush.bf16.msra.mxu2 %v2898_v20  ;;  %v2691_v17 = vld [vmem:[#allocation5 + $0x90] sm:$0xf0] }
  0x3b   :  { %v2881_v23 = vld [vmem:[#allocation5 + $0x200] sm:$0xf]  ;;  %v3937_v25 = vld [vmem:[#allocation5 + $0x20c] sm:$0xf0]  ;;  %v2754_v35 = vor.u32 %v3905_v22, %v2753_v21  ;;  %1536 = vmatpush.bf16.msra.mxu3 %v3026_v24 }
  0x3c   :  { %v3009_v26 = vld [vmem:[#allocation5 + $0x300] sm:$0xf]  ;;  %v3969_v27 = vld [vmem:[#allocation5 + $0x30c] sm:$0xf0]  ;;  %v2882_v36 = vor.u32 %v3937_v25, %v2881_v23  ;;  %1498 = vmatpush.bf16.msra.mxu0 %v2626_v31  ;;  %v2675_v31 = vld [vmem:[#allocation5 + $0x70] sm:$0xf0] }
  0x3d   :  { %v3249_v28 = vld [vmem:[#allocation5 + $0x4e0] sm:$0xf]  ;;  %v4029_v29 = vld [vmem:[#allocation5 + $0x4ec] sm:$0xf0]  ;;  %v3010_v39 = vor.u32 %v3969_v27, %v3009_v26  ;;  %1511 = vmatpush.bf16.msra.mxu1 %v2754_v35  ;;  %v2694_v26 = vor.u32 %v3887_v16, %v2691_v17  ;;  %v4027_v16 = vld [vmem:[#allocation5 + $0x4e4] sm:$0xf] }
  0x3e   :  { %v3377_v30 = vld [vmem:[#allocation5 + $0x5e0] sm:$0xf]  ;;  %v4061_v32 = vld [vmem:[#allocation5 + $0x5ec] sm:$0xf0]  ;;  %v3250_v40 = vor.u32 %v4029_v29, %v3249_v28  ;;  %1524 = vmatpush.bf16.msra.mxu2 %v2882_v36  ;;  %v3251_v17 = vld [vmem:[#allocation5 + $0x4f0] sm:$0xf0] }
  0x3f   :  { %v3505_v33 = vld [vmem:[#allocation5 + $0x6e0] sm:$0xf]  ;;  %v4093_v34 = vld [vmem:[#allocation5 + $0x6ec] sm:$0xf0]  ;;  %v3378_v41 = vor.u32 %v4061_v32, %v3377_v30  ;;  %1537 = vmatpush.bf16.msra.mxu3 %v3010_v39  ;;  %1499 = vmatmul.bf16.vlgmr.msra.gmra.mxu0 %v4459_v9  ;;  %v3883_v30 = vld [vmem:[#allocation5 + $0x64] sm:$0xf] }
  0x40   :  { %v3506_v42 = vor.u32 %v4093_v34, %v3505_v33  ;;  %v3233_v43 = vld [vmem:[#allocation5 + $0x4c0] sm:$0xf]  ;;  %v4025_v44 = vld [vmem:[#allocation5 + $0x4cc] sm:$0xf0]  ;;  %1543 = vmatpush.bf16.msrb.mxu0 %v3250_v40  ;;  %v2678_v38 = vor.u32 %v3883_v30, %v2675_v31  ;;  %v2979_v30 = vld [vmem:[#allocation5 + $0x2d0] sm:$0xf0] }
  0x41   :  { %v3361_v45 = vld [vmem:[#allocation5 + $0x5c0] sm:$0xf]  ;;  %v4057_v47 = vld [vmem:[#allocation5 + $0x5cc] sm:$0xf0]  ;;  %v3234_v52 = vor.u32 %v4025_v44, %v3233_v43  ;;  %1556 = vmatpush.bf16.msrb.mxu1 %v3378_v41  ;;  %1525 = vmatmul.bf16.vlgmr.msra.gmra.mxu2 %v4457_v8  ;;  %v2659_v43 = vld [vmem:[#allocation5 + $0x50] sm:$0xf0] }
  0x42   :  { %v3489_v48 = vld [vmem:[#allocation5 + $0x6c0] sm:$0xf]  ;;  %v4089_v49 = vld [vmem:[#allocation5 + $0x6cc] sm:$0xf0]  ;;  %1569 = vmatpush.bf16.msrb.mxu2 %v3506_v42  ;;  %v3362_v54 = vor.u32 %v4057_v47, %v3361_v45  ;;  %v3879_v42 = vld [vmem:[#allocation5 + $0x44] sm:$0xf] }
  0x43   :  { %v3217_v53 = vld [vmem:[#allocation5 + $0x4a0] sm:$0xf]  ;;  %v3490_v55 = vor.u32 %v4089_v49, %v3489_v48  ;;  %v4021_v56 = vld [vmem:[#allocation5 + $0x4ac] sm:$0xf0]  ;;  %1582 = vmatpush.bf16.msrb.mxu3 %v2742_v46  ;;  %v2662_v50 = vor.u32 %v3879_v42, %v2659_v43  ;;  %v3991_v31 = vld [vmem:[#allocation5 + $0x3c4] sm:$0xf] }
  0x44   :  { %v3345_v57 = vld [vmem:[#allocation5 + $0x5a0] sm:$0xf]  ;;  %v4053_v58 = vld [vmem:[#allocation5 + $0x5ac] sm:$0xf0]  ;;  %1544 = vmatpush.bf16.msrb.mxu0 %v3234_v52  ;;  %v3218_v0 = vor.u32 %v4021_v56, %v3217_v53  ;;  %v2835_v42 = vld [vmem:[#allocation5 + $0x1b0] sm:$0xf0] }
  0x45   :  { %v3473_v60 = vld [vmem:[#allocation5 + $0x6a0] sm:$0xf]  ;;  %v4085_v61 = vld [vmem:[#allocation5 + $0x6ac] sm:$0xf0]  ;;  %v3346_v1 = vor.u32 %v4053_v58, %v3345_v57  ;;  %1557 = vmatpush.bf16.msrb.mxu1 %v3362_v54  ;;  %v3875_v54 = vld [vmem:[#allocation5 + $0x24] sm:$0xf] }
  0x46   :  { %v3201_v2 = vld [vmem:[#allocation5 + $0x480] sm:$0xf]  ;;  %1570 = vmatpush.bf16.msrb.mxu2 %v3490_v55  ;;  %v3474_v5 = vor.u32 %v4085_v61, %v3473_v60  ;;  %v4017_v6 = vld [vmem:[#allocation5 + $0x48c] sm:$0xf0]  ;;  %v2643_v55 = vld [vmem:[#allocation5 + $0x30] sm:$0xf0] }
  0x47   :  { %v3329_v7 = vld [vmem:[#allocation5 + $0x580] sm:$0xf]  ;;  %1583 = vmatpush.bf16.msrb.mxu3 %v2726_v59  ;;  %v4049_v12 = vld [vmem:[#allocation5 + $0x58c] sm:$0xf0]  ;;  %v3202_v18 = vor.u32 %v4017_v6, %v3201_v2  ;;  %v3871_v2 = vld [vmem:[#allocation5 + $0x4] sm:$0xf] }
  0x48   :  { %v126_v10 = vld [vmem:[#allocation2 + $0x18] sm:$0xff]  ;;  %v4081_v14 = vld [vmem:[#allocation5 + $0x68c] sm:$0xf0]  ;;  %1545 = vmatpush.bf16.msrb.mxu0 %v3218_v0  ;;  %v3330_v20 = vor.u32 %v4049_v12, %v3329_v7  ;;  %v2646_v0 = vor.u32 %v3875_v54, %v2643_v55  ;;  %v3123_v12 = vld [vmem:[#allocation5 + $0x3f0] sm:$0xf0] }
  0x49   :  { %v3457_v13 = vld [vmem:[#allocation5 + $0x680] sm:$0xf]  ;;  %v4461_v15 = vpack.c.bf16 %v126_v10, %v126_v10  ;;  %v124_v19 = vld [vmem:[#allocation2 + $0x8] sm:$0xff]  ;;  %1558 = vmatpush.bf16.msrb.mxu1 %v3346_v1  ;;  %v3963_v6 = vld [vmem:[#allocation5 + $0x2e4] sm:$0xf] }
  0x4a   :  { %1571 = vmatpush.bf16.msrb.mxu2 %v3474_v5  ;;  %v3458_v21 = vor.u32 %v4081_v14, %v3457_v13  ;;  %v3185_v22 = vld [vmem:[#allocation5 + $0x460] sm:$0xf]  ;;  %v4013_v23 = vld [vmem:[#allocation5 + $0x46c] sm:$0xf0]  ;;  %v4466_v25 = vpack.c.bf16 %v124_v19, %v124_v19  ;;  %v2867_v5 = vld [vmem:[#allocation5 + $0x1f0] sm:$0xf0]  ;;  %v2630_v19 = vor.u32 %v3871_v2, %v2627_v3 }
  0x4b   :  { %1538 = vmatmul.bf16.vlgmr.msra.gmra.mxu3 %v4461_v15  ;;  %v3313_v24 = vld [vmem:[#allocation5 + $0x560] sm:$0xf]  ;;  %v4045_v27 = vld [vmem:[#allocation5 + $0x56c] sm:$0xf0]  ;;  %v3186_v32 = vor.u32 %v4013_v23, %v3185_v22  ;;  %v2995_v10 = vld [vmem:[#allocation5 + $0x2f0] sm:$0xf0] }
  0x4c   :  { %1584 = vmatpush.bf16.msrb.mxu3 %v2710_v11  ;;  %v3441_v28 = vld [vmem:[#allocation5 + $0x660] sm:$0xf]  ;;  %v4077_v29 = vld [vmem:[#allocation5 + $0x66c] sm:$0xf0]  ;;  %1512 = vmatmul.bf16.vlgmr.msra.gmra.mxu1 %v4466_v25  ;;  %v3314_v33 = vor.u32 %v4045_v27, %v3313_v24  ;;  %v3995_v11 = vld [vmem:[#allocation5 + $0x3e4] sm:$0xf]  ;;  %v2998_v23 = vor.u32 %v3963_v6, %v2995_v10 }
  0x4d   :  { %1546 = vmatpush.bf16.msrb.mxu0 %v3202_v18  ;;  %1559 = vmatpush.bf16.msrb.mxu1 %v3330_v20  ;;  %v3442_v34 = vor.u32 %v4077_v29, %v3441_v28  ;;  %v3169_v35 = vld [vmem:[#allocation5 + $0x440] sm:$0xf]  ;;  %v4009_v36 = vld [vmem:[#allocation5 + $0x44c] sm:$0xf0]  ;;  %v129_v18 = vld [vmem:[#allocation2 + $0x30] sm:$0xff]  ;;  %v2870_v20 = vor.u32 %v3931_v4, %v2867_v5  ;;  %v3126_v24 = vor.u32 %v3995_v11, %v3123_v12 }
  0x4e   :  { %1572 = vmatpush.bf16.msrb.mxu2 %v3458_v21  ;;  %v3297_v37 = vld [vmem:[#allocation5 + $0x540] sm:$0xf]  ;;  %v4041_v39 = vld [vmem:[#allocation5 + $0x54c] sm:$0xf0]  ;;  %v3170_v44 = vor.u32 %v4009_v36, %v3169_v35  ;;  %v127_v21 = vld [vmem:[#allocation2 + $0x20] sm:$0xff]  ;;  %v3254_v29 = vor.u32 %v4027_v16, %v3251_v17 }
  0x4f   :  { %v3425_v40 = vld [vmem:[#allocation5 + $0x640] sm:$0xf]  ;;  %v4073_v41 = vld [vmem:[#allocation5 + $0x64c] sm:$0xf0]  ;;  %v3298_v45 = vor.u32 %v4041_v39, %v3297_v37  ;;  %v2851_v27 = vld [vmem:[#allocation5 + $0x1d0] sm:$0xf0]  ;;  %v4471_v36 = vpack.c.bf16 %v127_v21, %v127_v21 }
  0x50   :  { %1585 = vmatpush.bf16.msrb.mxu3 %v2694_v26  ;;  %v3426_v46 = vor.u32 %v4073_v41, %v3425_v40  ;;  %v3153_v47 = vld [vmem:[#allocation5 + $0x420] sm:$0xf]  ;;  %v4005_v48 = vld [vmem:[#allocation5 + $0x42c] sm:$0xf0]  ;;  %v3927_v26 = vld [vmem:[#allocation5 + $0x1c4] sm:$0xf] }
  0x51   :  { %1547 = vmatpush.bf16.msrb.mxu0 %v3186_v32  ;;  %1560 = vmatpush.bf16.msrb.mxu1 %v3314_v33  ;;  %v3281_v49 = vld [vmem:[#allocation5 + $0x520] sm:$0xf]  ;;  %v4037_v51 = vld [vmem:[#allocation5 + $0x52c] sm:$0xf0]  ;;  %v3154_v56 = vor.u32 %v4005_v48, %v3153_v47  ;;  %v3959_v28 = vld [vmem:[#allocation5 + $0x2c4] sm:$0xf]  ;;  %v4469_v33 = vpack.c.bf16 %v129_v18, %v129_v18 }
  0x52   :  { %1573 = vmatpush.bf16.msrb.mxu2 %v3442_v34  ;;  %v3409_v52 = vld [vmem:[#allocation5 + $0x620] sm:$0xf]  ;;  %v4069_v53 = vld [vmem:[#allocation5 + $0x62c] sm:$0xf0]  ;;  %v3282_v59 = vor.u32 %v4037_v51, %v3281_v49  ;;  %v3107_v32 = vld [vmem:[#allocation5 + $0x3d0] sm:$0xf0]  ;;  %v2982_v39 = vor.u32 %v3959_v28, %v2979_v30 }
  0x53   :  { %v3137_v57 = vld [vmem:[#allocation5 + $0x400] sm:$0xf]  ;;  %v4001_v58 = vld [vmem:[#allocation5 + $0x40c] sm:$0xf0]  ;;  %v3410_v60 = vor.u32 %v4069_v53, %v3409_v52  ;;  %v4023_v34 = vld [vmem:[#allocation5 + $0x4c4] sm:$0xf]  ;;  %v3110_v40 = vor.u32 %v3991_v31, %v3107_v32 }
  0x54   :  { %1586 = vmatpush.bf16.msrb.mxu3 %v2678_v38  ;;  %v3265_v61 = vld [vmem:[#allocation5 + $0x500] sm:$0xf]  ;;  %v4033_v62 = vld [vmem:[#allocation5 + $0x50c] sm:$0xf0]  ;;  %v3138_v7 = vor.u32 %v4001_v58, %v3137_v57  ;;  %v3235_v35 = vld [vmem:[#allocation5 + $0x4d0] sm:$0xf0]  ;;  %v2854_v38 = vor.u32 %v3927_v26, %v2851_v27 }
  0x55   :  { %1548 = vmatpush.bf16.msrb.mxu0 %v3170_v44  ;;  %1561 = vmatpush.bf16.msrb.mxu1 %v3298_v45  ;;  %v3393_v63 = vld [vmem:[#allocation5 + $0x600] sm:$0xf]  ;;  %v4065_v1 = vld [vmem:[#allocation5 + $0x60c] sm:$0xf0]  ;;  %v3266_v13 = vor.u32 %v4033_v62, %v3265_v61  ;;  %v3923_v41 = vld [vmem:[#allocation5 + $0x1a4] sm:$0xf]  ;;  %v3238_v44 = vor.u32 %v4023_v34, %v3235_v35 }
  0x56   :  { %1574 = vmatpush.bf16.msrb.mxu2 %v3426_v46  ;;  %v3394_v14 = vor.u32 %v4065_v1, %v3393_v63  ;;  %v128_v22 = vld [vmem:[#allocation2 + $0x28] sm:$0xff]  ;;  %v3955_v43 = vld [vmem:[#allocation5 + $0x2a4] sm:$0xf] }
  0x57   :  { %v4473_v37 = vpack.c.bf16 %v128_v22, %v128_v22  ;;  %v2963_v45 = vld [vmem:[#allocation5 + $0x2b0] sm:$0xf0]  ;;  %v3987_v46 = vld [vmem:[#allocation5 + $0x3a4] sm:$0xf] }
  0x58   :  { %1587 = vmatpush.bf16.msrb.mxu3 %v2662_v50  ;;  %v3091_v47 = vld [vmem:[#allocation5 + $0x3b0] sm:$0xf0]  ;;  %v4019_v48 = vld [vmem:[#allocation5 + $0x4a4] sm:$0xf]  ;;  %v2838_v50 = vor.u32 %v3923_v41, %v2835_v42  ;;  %v2966_v51 = vor.u32 %v3955_v43, %v2963_v45 }
  0x59   :  { %1549 = vmatpush.bf16.msrb.mxu0 %v3154_v56  ;;  %1562 = vmatpush.bf16.msrb.mxu1 %v3282_v59  ;;  %v3219_v49 = vld [vmem:[#allocation5 + $0x4b0] sm:$0xf0]  ;;  %v3094_v52 = vor.u32 %v3987_v46, %v3091_v47  ;;  %v3919_v53 = vld [vmem:[#allocation5 + $0x184] sm:$0xf] }
  0x5a   :  { %1575 = vmatpush.bf16.msrb.mxu2 %v3410_v60  ;;  %v2819_v54 = vld [vmem:[#allocation5 + $0x190] sm:$0xf0]  ;;  %v3951_v55 = vld [vmem:[#allocation5 + $0x284] sm:$0xf]  ;;  %v3222_v56 = vor.u32 %v4019_v48, %v3219_v49 }
  0x5b   :  { %v2947_v57 = vld [vmem:[#allocation5 + $0x290] sm:$0xf0]  ;;  %v3983_v58 = vld [vmem:[#allocation5 + $0x384] sm:$0xf]  ;;  %v2822_v62 = vor.u32 %v3919_v53, %v2819_v54 }
  0x5c   :  { %1588 = vmatpush.bf16.msrb.mxu3 %v2646_v0  ;;  %v3075_v59 = vld [vmem:[#allocation5 + $0x390] sm:$0xf0]  ;;  %v4015_v60 = vld [vmem:[#allocation5 + $0x484] sm:$0xf]  ;;  %v2950_v63 = vor.u32 %v3951_v55, %v2947_v57 }
  0x5d   :  { %1550 = vmatpush.bf16.msrb.mxu0 %v3138_v7  ;;  %1563 = vmatpush.bf16.msrb.mxu1 %v3266_v13  ;;  %v3203_v61 = vld [vmem:[#allocation5 + $0x490] sm:$0xf0]  ;;  %v3078_v0 = vor.u32 %v3983_v58, %v3075_v59  ;;  %v3915_v1 = vld [vmem:[#allocation5 + $0x164] sm:$0xf]  ;;  %v2745_v58 = vld [vmem:[#allocation5 + $0xe8] sm:$0xf] }
  0x5e   :  { %1576 = vmatpush.bf16.msrb.mxu2 %v3394_v14  ;;  %v2803_v2 = vld [vmem:[#allocation5 + $0x170] sm:$0xf0]  ;;  %v3947_v3 = vld [vmem:[#allocation5 + $0x264] sm:$0xf]  ;;  %v3206_v4 = vor.u32 %v4015_v60, %v3203_v61  ;;  %v3902_v59 = vld [vmem:[#allocation5 + $0xf4] sm:$0xf0] }
  0x5f   :  { %v2931_v5 = vld [vmem:[#allocation5 + $0x270] sm:$0xf0]  ;;  %v3979_v6 = vld [vmem:[#allocation5 + $0x364] sm:$0xf]  ;;  %v2806_v12 = vor.u32 %v3915_v1, %v2803_v2 }
  0x60   :  { %1589 = vmatpush.bf16.msrb.mxu3 %v2630_v19  ;;  %1551 = vmatmul.bf16.vlgmr.msrb.gmra.mxu0 %v4471_v36  ;;  %v3059_v7 = vld [vmem:[#allocation5 + $0x370] sm:$0xf0]  ;;  %v4011_v10 = vld [vmem:[#allocation5 + $0x464] sm:$0xf]  ;;  %v2934_v13 = vor.u32 %v3947_v3, %v2931_v5  ;;  %v2746_v3 = vor.u32 %v3902_v59, %v2745_v58 }
  0x61   :  { %1595 = vmatpush.bf16.msra.mxu0 %v2870_v20  ;;  %1608 = vmatpush.bf16.msra.mxu1 %v2998_v23  ;;  %v3187_v11 = vld [vmem:[#allocation5 + $0x470] sm:$0xf0]  ;;  %v3062_v14 = vor.u32 %v3979_v6, %v3059_v7  ;;  %v3911_v16 = vld [vmem:[#allocation5 + $0x144] sm:$0xf] }
  0x62   :  { %1621 = vmatpush.bf16.msra.mxu2 %v3126_v24  ;;  %1564 = vmatmul.bf16.vlgmr.msrb.gmra.mxu1 %v4473_v37  ;;  %v2787_v17 = vld [vmem:[#allocation5 + $0x150] sm:$0xf0]  ;;  %v3943_v18 = vld [vmem:[#allocation5 + $0x244] sm:$0xf]  ;;  %v3190_v19 = vor.u32 %v4011_v10, %v3187_v11  ;;  %v2729_v11 = vld [vmem:[#allocation5 + $0xc8] sm:$0xf] }
  0x63   :  { %1577 = vmatmul.bf16.vlgmr.msrb.gmra.mxu2 %v4469_v33  ;;  %1590 = vmatmul.bf16.vlgmr.msrb.gmra.mxu3 %v4459_v9  ;;  %v2915_v20 = vld [vmem:[#allocation5 + $0x250] sm:$0xf0]  ;;  %v3975_v21 = vld [vmem:[#allocation5 + $0x344] sm:$0xf]  ;;  %v2790_v26 = vor.u32 %v3911_v16, %v2787_v17 }
  0x64   :  { %1634 = vmatpush.bf16.msra.mxu3 %v3254_v29  ;;  %v3043_v22 = vld [vmem:[#allocation5 + $0x350] sm:$0xf0]  ;;  %v4007_v23 = vld [vmem:[#allocation5 + $0x444] sm:$0xf]  ;;  %v2918_v28 = vor.u32 %v3943_v18, %v2915_v20 }
  0x65   :  { %1596 = vmatpush.bf16.msra.mxu0 %v2854_v38  ;;  %1609 = vmatpush.bf16.msra.mxu1 %v2982_v39  ;;  %v3171_v24 = vld [vmem:[#allocation5 + $0x450] sm:$0xf0]  ;;  %v3907_v27 = vld [vmem:[#allocation5 + $0x124] sm:$0xf]  ;;  %v3046_v29 = vor.u32 %v3975_v21, %v3043_v22 }
  0x66   :  { %1622 = vmatpush.bf16.msra.mxu2 %v3110_v40  ;;  %v2771_v30 = vld [vmem:[#allocation5 + $0x130] sm:$0xf0]  ;;  %v3939_v31 = vld [vmem:[#allocation5 + $0x224] sm:$0xf]  ;;  %v3174_v34 = vor.u32 %v4007_v23, %v3171_v24  ;;  %v2713_v24 = vld [vmem:[#allocation5 + $0xa8] sm:$0xf] }
  0x67   :  { %v2899_v32 = vld [vmem:[#allocation5 + $0x230] sm:$0xf0]  ;;  %v3971_v35 = vld [vmem:[#allocation5 + $0x324] sm:$0xf]  ;;  %v2774_v41 = vor.u32 %v3907_v27, %v2771_v30  ;;  %v2841_v27 = vld [vmem:[#allocation5 + $0x1a8] sm:$0xf] }
  0x68   :  { %1635 = vmatpush.bf16.msra.mxu3 %v3238_v44  ;;  %v3027_v38 = vld [vmem:[#allocation5 + $0x330] sm:$0xf0]  ;;  %v4003_v39 = vld [vmem:[#allocation5 + $0x424] sm:$0xf]  ;;  %v2902_v44 = vor.u32 %v3939_v31, %v2899_v32 }
  0x69   :  { %1597 = vmatpush.bf16.msra.mxu0 %v2838_v50  ;;  %1610 = vmatpush.bf16.msra.mxu1 %v2966_v51  ;;  %v3155_v40 = vld [vmem:[#allocation5 + $0x430] sm:$0xf0]  ;;  %v3903_v42 = vld [vmem:[#allocation5 + $0x104] sm:$0xf]  ;;  %v3030_v45 = vor.u32 %v3971_v35, %v3027_v38 }
  0x6a   :  { %1623 = vmatpush.bf16.msra.mxu2 %v3094_v52  ;;  %v2755_v43 = vld [vmem:[#allocation5 + $0x110] sm:$0xf0]  ;;  %v3935_v46 = vld [vmem:[#allocation5 + $0x204] sm:$0xf]  ;;  %v3158_v49 = vor.u32 %v4003_v39, %v3155_v40  ;;  %v2697_v40 = vld [vmem:[#allocation5 + $0x88] sm:$0xf] }
  0x6b   :  { %v2883_v47 = vld [vmem:[#allocation5 + $0x210] sm:$0xf0]  ;;  %v3967_v48 = vld [vmem:[#allocation5 + $0x304] sm:$0xf] }
  0x6c   :  { %1636 = vmatpush.bf16.msra.mxu3 %v3222_v56  ;;  %v3011_v50 = vld [vmem:[#allocation5 + $0x310] sm:$0xf0]  ;;  %v3999_v51 = vld [vmem:[#allocation5 + $0x404] sm:$0xf]  ;;  %v2758_v56 = vor.u32 %v3903_v42, %v2755_v43  ;;  %v2886_v60 = vor.u32 %v3935_v46, %v2883_v47  ;;  %v2825_v42 = vld [vmem:[#allocation5 + $0x188] sm:$0xf] }
  0x6d   :  { %1598 = vmatpush.bf16.msra.mxu0 %v2822_v62  ;;  %1611 = vmatpush.bf16.msra.mxu1 %v2950_v63  ;;  %v3139_v52 = vld [vmem:[#allocation5 + $0x410] sm:$0xf0]  ;;  %v4059_v53 = vld [vmem:[#allocation5 + $0x5e4] sm:$0xf]  ;;  %v3014_v61 = vor.u32 %v3967_v48, %v3011_v50  ;;  %v2873_v62 = vld [vmem:[#allocation5 + $0x1e8] sm:$0xf] }
  0x6e   :  { %1624 = vmatpush.bf16.msra.mxu2 %v3078_v0  ;;  %v3379_v54 = vld [vmem:[#allocation5 + $0x5f0] sm:$0xf0]  ;;  %v4091_v55 = vld [vmem:[#allocation5 + $0x6e4] sm:$0xf]  ;;  %v3934_v63 = vld [vmem:[#allocation5 + $0x1f4] sm:$0xf0]  ;;  %v3142_v0 = vor.u32 %v3999_v51, %v3139_v52 }
  0x6f   :  { %v3507_v57 = vld [vmem:[#allocation5 + $0x6f0] sm:$0xf0]  ;;  %v3382_v1 = vor.u32 %v4059_v53, %v3379_v54  ;;  %v4087_v6 = vld [vmem:[#allocation5 + $0x6c4] sm:$0xf]  ;;  %v2874_v7 = vor.u32 %v3934_v63, %v2873_v62  ;;  %v3922_v43 = vld [vmem:[#allocation5 + $0x194] sm:$0xf0] }
  0x70   :  { %1637 = vmatpush.bf16.msra.mxu3 %v3206_v4  ;;  %v3510_v2 = vor.u32 %v4091_v55, %v3507_v57  ;;  %v4055_v4 = vld [vmem:[#allocation5 + $0x5c4] sm:$0xf]  ;;  %v3363_v5 = vld [vmem:[#allocation5 + $0x5d0] sm:$0xf0]  ;;  %v2826_v50 = vor.u32 %v3922_v43, %v2825_v42  ;;  %v2681_v52 = vld [vmem:[#allocation5 + $0x68] sm:$0xf] }
  0x71   :  { %1599 = vmatpush.bf16.msra.mxu0 %v2806_v12  ;;  %1612 = vmatpush.bf16.msra.mxu1 %v2934_v13  ;;  %v3491_v10 = vld [vmem:[#allocation5 + $0x6d0] sm:$0xf0]  ;;  %v3898_v12 = vld [vmem:[#allocation5 + $0xd4] sm:$0xf0]  ;;  %v2857_v13 = vld [vmem:[#allocation5 + $0x1c8] sm:$0xf]  ;;  %v3366_v16 = vor.u32 %v4055_v4, %v3363_v5 }
  0x72   :  { %1625 = vmatpush.bf16.msra.mxu2 %v3062_v14  ;;  %v3930_v14 = vld [vmem:[#allocation5 + $0x1d4] sm:$0xf0]  ;;  %v3494_v17 = vor.u32 %v4087_v6, %v3491_v10  ;;  %v2730_v18 = vor.u32 %v3898_v12, %v2729_v11  ;;  %v3347_v20 = vld [vmem:[#allocation5 + $0x5b0] sm:$0xf0]  ;;  %v4083_v21 = vld [vmem:[#allocation5 + $0x6a4] sm:$0xf] }
  0x73   :  { %v2858_v22 = vor.u32 %v3930_v14, %v2857_v13  ;;  %v3475_v23 = vld [vmem:[#allocation5 + $0x6b0] sm:$0xf0]  ;;  %v4047_v32 = vld [vmem:[#allocation5 + $0x584] sm:$0xf]  ;;  %v3886_v53 = vld [vmem:[#allocation5 + $0x74] sm:$0xf0] }
  0x74   :  { %1638 = vmatpush.bf16.msra.mxu3 %v3190_v19  ;;  %v4051_v19 = vld [vmem:[#allocation5 + $0x5a4] sm:$0xf]  ;;  %v3478_v30 = vor.u32 %v4083_v21, %v3475_v23  ;;  %v3459_v39 = vld [vmem:[#allocation5 + $0x690] sm:$0xf0]  ;;  %v2809_v54 = vld [vmem:[#allocation5 + $0x168] sm:$0xf]  ;;  %v2682_v58 = vor.u32 %v3886_v53, %v2681_v52 }
  0x75   :  { %1600 = vmatpush.bf16.msra.mxu0 %v2790_v26  ;;  %1613 = vmatpush.bf16.msra.mxu1 %v2918_v28  ;;  %v3894_v26 = vld [vmem:[#allocation5 + $0xb4] sm:$0xf0]  ;;  %v4079_v35 = vld [vmem:[#allocation5 + $0x684] sm:$0xf]  ;;  %v3315_v48 = vld [vmem:[#allocation5 + $0x570] sm:$0xf0] }
  0x76   :  { %1626 = vmatpush.bf16.msra.mxu2 %v3046_v29  ;;  %v3926_v28 = vld [vmem:[#allocation5 + $0x1b4] sm:$0xf0]  ;;  %v3350_v29 = vor.u32 %v4051_v19, %v3347_v20  ;;  %v2714_v31 = vor.u32 %v3894_v26, %v2713_v24  ;;  %v4043_v47 = vld [vmem:[#allocation5 + $0x564] sm:$0xf]  ;;  %v3443_v51 = vld [vmem:[#allocation5 + $0x670] sm:$0xf0] }
  0x77   :  { %v2842_v38 = vor.u32 %v3926_v28, %v2841_v27  ;;  %v3918_v55 = vld [vmem:[#allocation5 + $0x174] sm:$0xf0]  ;;  %v4039_v59 = vld [vmem:[#allocation5 + $0x544] sm:$0xf]  ;;  %v3427_v63 = vld [vmem:[#allocation5 + $0x650] sm:$0xf0] }
  0x78   :  { %1639 = vmatpush.bf16.msra.mxu3 %v3174_v34  ;;  %v3331_v34 = vld [vmem:[#allocation5 + $0x590] sm:$0xf0]  ;;  %v2810_v62 = vor.u32 %v3918_v55, %v2809_v54  ;;  %v4067_v11 = vld [vmem:[#allocation5 + $0x624] sm:$0xf]  ;;  %v2649_v14 = vld [vmem:[#allocation5 + $0x28] sm:$0xf] }
  0x79   :  { %1601 = vmatpush.bf16.msra.mxu0 %v2774_v41  ;;  %1614 = vmatpush.bf16.msra.mxu1 %v2902_v44  ;;  %v3890_v41 = vld [vmem:[#allocation5 + $0x94] sm:$0xf0]  ;;  %v3334_v44 = vor.u32 %v4047_v32, %v3331_v34  ;;  %v3283_v10 = vld [vmem:[#allocation5 + $0x530] sm:$0xf0]  ;;  %v4031_v20 = vld [vmem:[#allocation5 + $0x504] sm:$0xf] }
  0x7a   :  { %1627 = vmatpush.bf16.msra.mxu2 %v3030_v45  ;;  %v3462_v45 = vor.u32 %v4079_v35, %v3459_v39  ;;  %v2698_v46 = vor.u32 %v3890_v41, %v2697_v40  ;;  %v3411_v13 = vld [vmem:[#allocation5 + $0x630] sm:$0xf0]  ;;  %v4063_v24 = vld [vmem:[#allocation5 + $0x604] sm:$0xf]  ;;  %v2633_v27 = vld [vmem:[#allocation5 + $0x8] sm:$0xf] }
  0x7b   :  { %v3267_v21 = vld [vmem:[#allocation5 + $0x510] sm:$0xf0]  ;;  %v3001_v32 = vld [vmem:[#allocation5 + $0x2e8] sm:$0xf]  ;;  %v3966_v34 = vld [vmem:[#allocation5 + $0x2f4] sm:$0xf0] }
  0x7c   :  { %1640 = vmatpush.bf16.msra.mxu3 %v3158_v49  ;;  %v4075_v49 = vld [vmem:[#allocation5 + $0x664] sm:$0xf]  ;;  %v3395_v26 = vld [vmem:[#allocation5 + $0x610] sm:$0xf0]  ;;  %v3129_v35 = vld [vmem:[#allocation5 + $0x3e8] sm:$0xf] }
  0x7d   :  { %1602 = vmatpush.bf16.msra.mxu0 %v2758_v56  ;;  %1615 = vmatpush.bf16.msra.mxu1 %v2886_v60  ;;  %v3318_v56 = vor.u32 %v4043_v47, %v3315_v48  ;;  %v3446_v57 = vor.u32 %v4075_v49, %v3443_v51  ;;  %v3299_v60 = vld [vmem:[#allocation5 + $0x550] sm:$0xf0]  ;;  %v3998_v39 = vld [vmem:[#allocation5 + $0x3f4] sm:$0xf0]  ;;  %v3257_v40 = vld [vmem:[#allocation5 + $0x4e8] sm:$0xf]  ;;  %v3398_v42 = vor.u32 %v4063_v24, %v3395_v26 }
  0x7e   :  { %1628 = vmatpush.bf16.msra.mxu2 %v3014_v61  ;;  %v4071_v61 = vld [vmem:[#allocation5 + $0x644] sm:$0xf]  ;;  %v3302_v4 = vor.u32 %v4039_v59, %v3299_v60  ;;  %v4030_v41 = vld [vmem:[#allocation5 + $0x4f4] sm:$0xf0]  ;;  %v3002_v47 = vor.u32 %v3966_v34, %v3001_v32  ;;  %v3130_v48 = vor.u32 %v3998_v39, %v3129_v35  ;;  %v3113_v52 = vld [vmem:[#allocation5 + $0x3c8] sm:$0xf] }
  0x7f   :  { %v3430_v5 = vor.u32 %v4071_v61, %v3427_v63  ;;  %v3258_v49 = vor.u32 %v4030_v41, %v3257_v40  ;;  %v3962_v51 = vld [vmem:[#allocation5 + $0x2d4] sm:$0xf0]  ;;  %v3241_v55 = vld [vmem:[#allocation5 + $0x4c8] sm:$0xf] }
  0x80   :  { %1641 = vmatpush.bf16.msra.mxu3 %v3142_v0  ;;  %1603 = vmatmul.bf16.vlgmr.msra.gmra.mxu0 %v4466_v25  ;;  %v2665_v0 = vld [vmem:[#allocation5 + $0x48] sm:$0xf]  ;;  %v3994_v54 = vld [vmem:[#allocation5 + $0x3d4] sm:$0xf0] }
  0x81   :  { %1647 = vmatpush.bf16.msrb.mxu0 %v3382_v1  ;;  %1660 = vmatpush.bf16.msrb.mxu1 %v3510_v2  ;;  %v3882_v1 = vld [vmem:[#allocation5 + $0x54] sm:$0xf0]  ;;  %v2793_v2 = vld [vmem:[#allocation5 + $0x148] sm:$0xf]  ;;  %v3114_v60 = vor.u32 %v3994_v54, %v3113_v52 }
  0x82   :  { %1673 = vmatpush.bf16.msrb.mxu2 %v2746_v3  ;;  %1616 = vmatmul.bf16.vlgmr.msra.gmra.mxu1 %v4457_v8  ;;  %v3914_v3 = vld [vmem:[#allocation5 + $0x154] sm:$0xf0]  ;;  %v2666_v6 = vor.u32 %v3882_v1, %v2665_v0  ;;  %v3097_v0 = vld [vmem:[#allocation5 + $0x3a8] sm:$0xf] }
  0x83   :  { %1629 = vmatmul.bf16.vlgmr.msra.gmra.mxu2 %v4461_v15  ;;  %1642 = vmatmul.bf16.vlgmr.msra.gmra.mxu3 %v4471_v36  ;;  %v2794_v12 = vor.u32 %v3914_v3, %v2793_v2  ;;  %v3958_v63 = vld [vmem:[#allocation5 + $0x2b4] sm:$0xf0]  ;;  %v3225_v3 = vld [vmem:[#allocation5 + $0x4a8] sm:$0xf] }
  0x84   :  { %1686 = vmatpush.bf16.msrb.mxu3 %v2874_v7  ;;  %v4035_v7 = vld [vmem:[#allocation5 + $0x524] sm:$0xf]  ;;  %v3990_v2 = vld [vmem:[#allocation5 + $0x3b4] sm:$0xf0]  ;;  %v2937_v26 = vld [vmem:[#allocation5 + $0x268] sm:$0xf] }
  0x85   :  { %1648 = vmatpush.bf16.msrb.mxu0 %v3366_v16  ;;  %1661 = vmatpush.bf16.msrb.mxu1 %v3494_v17  ;;  %v3878_v16 = vld [vmem:[#allocation5 + $0x34] sm:$0xf0]  ;;  %v2777_v17 = vld [vmem:[#allocation5 + $0x128] sm:$0xf]  ;;  %v3286_v19 = vor.u32 %v4035_v7, %v3283_v10  ;;  %v3098_v10 = vor.u32 %v3990_v2, %v3097_v0 }
  0x86   :  { %1674 = vmatpush.bf16.msrb.mxu2 %v2730_v18  ;;  %v3910_v18 = vld [vmem:[#allocation5 + $0x134] sm:$0xf0]  ;;  %v2650_v23 = vor.u32 %v3878_v16, %v2649_v14  ;;  %v3081_v14 = vld [vmem:[#allocation5 + $0x388] sm:$0xf] }
  0x87   :  { %v2778_v28 = vor.u32 %v3910_v18, %v2777_v17  ;;  %v3986_v17 = vld [vmem:[#allocation5 + $0x394] sm:$0xf0]  ;;  %v3209_v18 = vld [vmem:[#allocation5 + $0x488] sm:$0xf] }
  0x88   :  { %1687 = vmatpush.bf16.msrb.mxu3 %v2858_v22  ;;  %v3414_v22 = vor.u32 %v4067_v11, %v3411_v13  ;;  %v3954_v13 = vld [vmem:[#allocation5 + $0x294] sm:$0xf0]  ;;  %v3321_v34 = vld [vmem:[#allocation5 + $0x568] sm:$0xf] }
  0x89   :  { %1649 = vmatpush.bf16.msrb.mxu0 %v3350_v29  ;;  %1662 = vmatpush.bf16.msrb.mxu1 %v3478_v30  ;;  %v3874_v29 = vld [vmem:[#allocation5 + $0x14] sm:$0xf0]  ;;  %v2761_v30 = vld [vmem:[#allocation5 + $0x108] sm:$0xf] }
  0x8a   :  { %1675 = vmatpush.bf16.msrb.mxu2 %v2714_v31  ;;  %v3906_v31 = vld [vmem:[#allocation5 + $0x114] sm:$0xf0]  ;;  %v2634_v43 = vor.u32 %v3874_v29, %v2633_v27  ;;  %v2921_v41 = vld [vmem:[#allocation5 + $0x248] sm:$0xf] }
  0x8b   :  { %v3950_v27 = vld [vmem:[#allocation5 + $0x274] sm:$0xf0] }
  0x8c   :  { %1688 = vmatpush.bf16.msrb.mxu3 %v2842_v38  ;;  %v3270_v38 = vor.u32 %v4031_v20, %v3267_v21  ;;  %v3337_v20 = vld [vmem:[#allocation5 + $0x588] sm:$0xf]  ;;  %v4050_v21 = vld [vmem:[#allocation5 + $0x594] sm:$0xf0] }
  0x8d   :  { %1650 = vmatpush.bf16.msrb.mxu0 %v3334_v44  ;;  %1663 = vmatpush.bf16.msrb.mxu1 %v3462_v45  ;;  %v3385_v44 = vld [vmem:[#allocation5 + $0x5e8] sm:$0xf]  ;;  %v4062_v45 = vld [vmem:[#allocation5 + $0x5f4] sm:$0xf0]  ;;  %v3338_v29 = vor.u32 %v4050_v21, %v3337_v20 }
  0x8e   :  { %1676 = vmatpush.bf16.msrb.mxu2 %v2698_v46  ;;  %v2762_v46 = vor.u32 %v3906_v31, %v2761_v30  ;;  %v3386_v53 = vor.u32 %v4062_v45, %v3385_v44  ;;  %v3982_v30 = vld [vmem:[#allocation5 + $0x374] sm:$0xf0]  ;;  %v3193_v31 = vld [vmem:[#allocation5 + $0x468] sm:$0xf] }
  0x8f   :  { %v4014_v32 = vld [vmem:[#allocation5 + $0x474] sm:$0xf0] }
  0x90   :  { %1689 = vmatpush.bf16.msrb.mxu3 %v2826_v50  ;;  %v2985_v50 = vld [vmem:[#allocation5 + $0x2c8] sm:$0xf]  ;;  %v4046_v35 = vld [vmem:[#allocation5 + $0x574] sm:$0xf0]  ;;  %v3194_v40 = vor.u32 %v4014_v32, %v3193_v31  ;;  %v3896_v31 = vld [vmem:[#allocation5 + $0xcc] sm:$0xf] }
  0x91   :  { %1651 = vmatpush.bf16.msrb.mxu0 %v3318_v56  ;;  %1664 = vmatpush.bf16.msrb.mxu1 %v3446_v57  ;;  %v4026_v56 = vld [vmem:[#allocation5 + $0x4d4] sm:$0xf0]  ;;  %v3369_v57 = vld [vmem:[#allocation5 + $0x5c8] sm:$0xf]  ;;  %v2986_v59 = vor.u32 %v3962_v51, %v2985_v50  ;;  %v3322_v44 = vor.u32 %v4046_v35, %v3321_v34  ;;  %v2731_v34 = vld [vmem:[#allocation5 + $0xd8] sm:$0xf0] }
  0x92   :  { %1677 = vmatpush.bf16.msrb.mxu2 %v2682_v58  ;;  %v4058_v58 = vld [vmem:[#allocation5 + $0x5d4] sm:$0xf0]  ;;  %v3242_v61 = vor.u32 %v4026_v56, %v3241_v55  ;;  %v3033_v55 = vld [vmem:[#allocation5 + $0x328] sm:$0xf]  ;;  %v3928_v35 = vld [vmem:[#allocation5 + $0x1cc] sm:$0xf] }
  0x93   :  { %v3370_v1 = vor.u32 %v4058_v58, %v3369_v57  ;;  %v3978_v45 = vld [vmem:[#allocation5 + $0x354] sm:$0xf0]  ;;  %v3161_v58 = vld [vmem:[#allocation5 + $0x428] sm:$0xf] }
  0x94   :  { %1690 = vmatpush.bf16.msrb.mxu3 %v2810_v62  ;;  %v2969_v62 = vld [vmem:[#allocation5 + $0x2a8] sm:$0xf]  ;;  %v3942_v54 = vld [vmem:[#allocation5 + $0x234] sm:$0xf0] }
  0x95   :  { %1652 = vmatpush.bf16.msrb.mxu0 %v3302_v4  ;;  %1665 = vmatpush.bf16.msrb.mxu1 %v3430_v5  ;;  %v4022_v4 = vld [vmem:[#allocation5 + $0x4b4] sm:$0xf0]  ;;  %v3353_v5 = vld [vmem:[#allocation5 + $0x5a8] sm:$0xf]  ;;  %v2970_v7 = vor.u32 %v3958_v63, %v2969_v62 }
  0x96   :  { %1678 = vmatpush.bf16.msrb.mxu2 %v2666_v6  ;;  %v4054_v6 = vld [vmem:[#allocation5 + $0x5b4] sm:$0xf0]  ;;  %v3226_v11 = vor.u32 %v4022_v4, %v3225_v3  ;;  %v2889_v63 = vld [vmem:[#allocation5 + $0x208] sm:$0xf] }
  0x97   :  { %v3354_v16 = vor.u32 %v4054_v6, %v3353_v5  ;;  %v3974_v57 = vld [vmem:[#allocation5 + $0x334] sm:$0xf0]  ;;  %v3017_v3 = vld [vmem:[#allocation5 + $0x308] sm:$0xf] }
  0x98   :  { %1691 = vmatpush.bf16.msrb.mxu3 %v2794_v12  ;;  %v2953_v12 = vld [vmem:[#allocation5 + $0x288] sm:$0xf]  ;;  %v3938_v0 = vld [vmem:[#allocation5 + $0x214] sm:$0xf0] }
  0x99   :  { %1653 = vmatpush.bf16.msrb.mxu0 %v3286_v19  ;;  %1666 = vmatpush.bf16.msrb.mxu1 %v3414_v22  ;;  %v4018_v19 = vld [vmem:[#allocation5 + $0x494] sm:$0xf0]  ;;  %v2954_v22 = vor.u32 %v3954_v13, %v2953_v12  ;;  %v3145_v5 = vld [vmem:[#allocation5 + $0x408] sm:$0xf] }
  0x9a   :  { %1679 = vmatpush.bf16.msrb.mxu2 %v2650_v23  ;;  %v3082_v23 = vor.u32 %v3986_v17, %v3081_v14  ;;  %v3210_v24 = vor.u32 %v4018_v19, %v3209_v18  ;;  %v3970_v4 = vld [vmem:[#allocation5 + $0x314] sm:$0xf0]  ;;  %v3513_v12 = vld [vmem:[#allocation5 + $0x6e8] sm:$0xf]  ;;  %v3900_v14 = vld [vmem:[#allocation5 + $0xec] sm:$0xf] }
  0x9b   :  { %v4094_v13 = vld [vmem:[#allocation5 + $0x6f4] sm:$0xf0]  ;;  %v2747_v17 = vld [vmem:[#allocation5 + $0xf8] sm:$0xf0]  ;;  %v3932_v18 = vld [vmem:[#allocation5 + $0x1ec] sm:$0xf]  ;;  %v3018_v20 = vor.u32 %v3970_v4, %v3017_v3 }
  0x9c   :  { %1692 = vmatpush.bf16.msrb.mxu3 %v2778_v28  ;;  %v3065_v28 = vld [vmem:[#allocation5 + $0x368] sm:$0xf]  ;;  %v2875_v19 = vld [vmem:[#allocation5 + $0x1f8] sm:$0xf0] }
  0x9d   :  { %1654 = vmatpush.bf16.msrb.mxu0 %v3270_v38  ;;  %1667 = vmatpush.bf16.msrb.mxu1 %v3398_v42  ;;  %v2938_v38 = vor.u32 %v3950_v27, %v2937_v26  ;;  %v3066_v39 = vor.u32 %v3982_v30, %v3065_v28  ;;  %v3946_v42 = vld [vmem:[#allocation5 + $0x254] sm:$0xf0]  ;;  %v3514_v26 = vor.u32 %v4094_v13, %v3513_v12  ;;  %v3449_v4 = vld [vmem:[#allocation5 + $0x668] sm:$0xf]  ;;  %v2811_v12 = vld [vmem:[#allocation5 + $0x178] sm:$0xf0] }
  0x9e   :  { %1680 = vmatpush.bf16.msrb.mxu2 %v2634_v43  ;;  %v3049_v43 = vld [vmem:[#allocation5 + $0x348] sm:$0xf]  ;;  %v2922_v50 = vor.u32 %v3946_v42, %v2921_v41  ;;  %v2750_v27 = vor.u32 %v3900_v14, %v2747_v17  ;;  %v2878_v28 = vor.u32 %v3932_v18, %v2875_v19  ;;  %v4090_v30 = vld [vmem:[#allocation5 + $0x6d4] sm:$0xf0]  ;;  %v2734_v42 = vor.u32 %v3896_v31, %v2731_v34  ;;  %v3948_v13 = vld [vmem:[#allocation5 + $0x26c] sm:$0xf] }
  0x9f   :  { %v3050_v51 = vor.u32 %v3978_v45, %v3049_v43  ;;  %v4086_v45 = vld [vmem:[#allocation5 + $0x6b4] sm:$0xf0]  ;;  %v2939_v14 = vld [vmem:[#allocation5 + $0x278] sm:$0xf0] }
  0xa0   :  { %1693 = vmatpush.bf16.msrb.mxu3 %v2762_v46  ;;  %1655 = vmatmul.bf16.vlgmr.msrb.gmra.mxu0 %v4473_v37  ;;  %v3177_v46 = vld [vmem:[#allocation5 + $0x448] sm:$0xf] }
  0xa1   :  { %1699 = vmatpush.bf16.msra.mxu0 %v3002_v47  ;;  %1712 = vmatpush.bf16.msra.mxu1 %v3130_v48  ;;  %v4010_v47 = vld [vmem:[#allocation5 + $0x454] sm:$0xf0]  ;;  %v3305_v48 = vld [vmem:[#allocation5 + $0x548] sm:$0xf] }
  0xa2   :  { %1725 = vmatpush.bf16.msra.mxu2 %v3258_v49  ;;  %1668 = vmatmul.bf16.vlgmr.msrb.gmra.mxu1 %v4469_v33  ;;  %v4042_v49 = vld [vmem:[#allocation5 + $0x554] sm:$0xf0]  ;;  %v3178_v52 = vor.u32 %v4010_v47, %v3177_v46  ;;  %v3892_v46 = vld [vmem:[#allocation5 + $0xac] sm:$0xf] }
  0xa3   :  { %1681 = vmatmul.bf16.vlgmr.msrb.gmra.mxu2 %v4459_v9  ;;  %1694 = vmatmul.bf16.vlgmr.msrb.gmra.mxu3 %v4466_v25  ;;  %v3306_v56 = vor.u32 %v4042_v49, %v3305_v48  ;;  %v2715_v48 = vld [vmem:[#allocation5 + $0xb8] sm:$0xf0]  ;;  %v3924_v49 = vld [vmem:[#allocation5 + $0x1ac] sm:$0xf] }
  0xa4   :  { %1738 = vmatpush.bf16.msra.mxu3 %v3386_v53  ;;  %v2905_v53 = vld [vmem:[#allocation5 + $0x228] sm:$0xf] }
  0xa5   :  { %1700 = vmatpush.bf16.msra.mxu0 %v2986_v59  ;;  %1713 = vmatpush.bf16.msra.mxu1 %v3114_v60  ;;  %v4006_v59 = vld [vmem:[#allocation5 + $0x434] sm:$0xf0]  ;;  %v3289_v60 = vld [vmem:[#allocation5 + $0x528] sm:$0xf]  ;;  %v2906_v62 = vor.u32 %v3942_v54, %v2905_v53  ;;  %v2718_v54 = vor.u32 %v3892_v46, %v2715_v48  ;;  %v2907_v46 = vld [vmem:[#allocation5 + $0x238] sm:$0xf0] }
  0xa6   :  { %1726 = vmatpush.bf16.msra.mxu2 %v3242_v61  ;;  %v4038_v61 = vld [vmem:[#allocation5 + $0x534] sm:$0xf0]  ;;  %v3162_v2 = vor.u32 %v4006_v59, %v3161_v58  ;;  %v3888_v58 = vld [vmem:[#allocation5 + $0x8c] sm:$0xf] }
  0xa7   :  { %v3290_v6 = vor.u32 %v4038_v61, %v3289_v60  ;;  %v2699_v60 = vld [vmem:[#allocation5 + $0x98] sm:$0xf0]  ;;  %v3920_v61 = vld [vmem:[#allocation5 + $0x18c] sm:$0xf] }
  0xa8   :  { %1739 = vmatpush.bf16.msra.mxu3 %v3370_v1  ;;  %v3034_v1 = vor.u32 %v3974_v57, %v3033_v55  ;;  %v4082_v57 = vld [vmem:[#allocation5 + $0x694] sm:$0xf0] }
  0xa9   :  { %1701 = vmatpush.bf16.msra.mxu0 %v2970_v7  ;;  %1714 = vmatpush.bf16.msra.mxu1 %v3098_v10  ;;  %v4002_v7 = vld [vmem:[#allocation5 + $0x414] sm:$0xf0]  ;;  %v3273_v10 = vld [vmem:[#allocation5 + $0x508] sm:$0xf] }
  0xaa   :  { %1727 = vmatpush.bf16.msra.mxu2 %v3226_v11  ;;  %v4034_v11 = vld [vmem:[#allocation5 + $0x514] sm:$0xf0]  ;;  %v3146_v21 = vor.u32 %v4002_v7, %v3145_v5 }
  0xab   :  { %v4078_v5 = vld [vmem:[#allocation5 + $0x674] sm:$0xf0] }
  0xac   :  { %1740 = vmatpush.bf16.msra.mxu3 %v3354_v16  ;;  %v2890_v16 = vor.u32 %v3938_v0, %v2889_v63  ;;  %v3952_v63 = vld [vmem:[#allocation5 + $0x28c] sm:$0xf]  ;;  %v2955_v0 = vld [vmem:[#allocation5 + $0x298] sm:$0xf0] }
  0xad   :  { %1702 = vmatpush.bf16.msra.mxu0 %v2954_v22  ;;  %1715 = vmatpush.bf16.msra.mxu1 %v3082_v23  ;;  %v3964_v22 = vld [vmem:[#allocation5 + $0x2ec] sm:$0xf]  ;;  %v3003_v23 = vld [vmem:[#allocation5 + $0x2f8] sm:$0xf0]  ;;  %v2958_v7 = vor.u32 %v3952_v63, %v2955_v0 }
  0xae   :  { %1728 = vmatpush.bf16.msra.mxu2 %v3210_v24  ;;  %v3274_v24 = vor.u32 %v4034_v11, %v3273_v10  ;;  %v3006_v32 = vor.u32 %v3964_v22, %v3003_v23  ;;  %v2683_v10 = vld [vmem:[#allocation5 + $0x78] sm:$0xf0]  ;;  %v3916_v11 = vld [vmem:[#allocation5 + $0x16c] sm:$0xf]  ;;  %v2942_v23 = vor.u32 %v3948_v13, %v2939_v14 }
  0xaf   :  { %v2814_v19 = vor.u32 %v3916_v11, %v2811_v12  ;;  %v3880_v22 = vld [vmem:[#allocation5 + $0x4c] sm:$0xf] }
  0xb0   :  { %1741 = vmatpush.bf16.msra.mxu3 %v3338_v29  ;;  %v3497_v29 = vld [vmem:[#allocation5 + $0x6c8] sm:$0xf]  ;;  %v4028_v63 = vld [vmem:[#allocation5 + $0x4ec] sm:$0xf] }
  0xb1   :  { %1703 = vmatpush.bf16.msra.mxu0 %v2938_v38  ;;  %1716 = vmatpush.bf16.msra.mxu1 %v3066_v39  ;;  %v2859_v38 = vld [vmem:[#allocation5 + $0x1d8] sm:$0xf0]  ;;  %v3960_v39 = vld [vmem:[#allocation5 + $0x2cc] sm:$0xf]  ;;  %v3498_v41 = vor.u32 %v4090_v30, %v3497_v29 }
  0xb2   :  { %1729 = vmatpush.bf16.msra.mxu2 %v3194_v40  ;;  %v2987_v40 = vld [vmem:[#allocation5 + $0x2d8] sm:$0xf0]  ;;  %v2862_v43 = vor.u32 %v3928_v35, %v2859_v38  ;;  %v3417_v35 = vld [vmem:[#allocation5 + $0x628] sm:$0xf]  ;;  %v4070_v38 = vld [vmem:[#allocation5 + $0x634] sm:$0xf0] }
  0xb3   :  { %v2990_v47 = vor.u32 %v3960_v39, %v2987_v40  ;;  %v2923_v29 = vld [vmem:[#allocation5 + $0x258] sm:$0xf0]  ;;  %v3876_v39 = vld [vmem:[#allocation5 + $0x2c] sm:$0xf]  ;;  %v3418_v48 = vor.u32 %v4070_v38, %v3417_v35 }
  0xb4   :  { %1742 = vmatpush.bf16.msra.mxu3 %v3322_v44  ;;  %v3481_v44 = vld [vmem:[#allocation5 + $0x6a8] sm:$0xf]  ;;  %v3099_v35 = vld [vmem:[#allocation5 + $0x3b8] sm:$0xf0]  ;;  %v4020_v38 = vld [vmem:[#allocation5 + $0x4ac] sm:$0xf] }
  0xb5   :  { %1704 = vmatpush.bf16.msra.mxu0 %v2922_v50  ;;  %1717 = vmatpush.bf16.msra.mxu1 %v3050_v51  ;;  %v2843_v50 = vld [vmem:[#allocation5 + $0x1b8] sm:$0xf0]  ;;  %v3956_v51 = vld [vmem:[#allocation5 + $0x2ac] sm:$0xf]  ;;  %v3482_v53 = vor.u32 %v4086_v45, %v3481_v44 }
  0xb6   :  { %1730 = vmatpush.bf16.msra.mxu2 %v3178_v52  ;;  %v2971_v52 = vld [vmem:[#allocation5 + $0x2b8] sm:$0xf0]  ;;  %v2846_v55 = vor.u32 %v3924_v49, %v2843_v50  ;;  %v3940_v45 = vld [vmem:[#allocation5 + $0x22c] sm:$0xf]  ;;  %v3401_v49 = vld [vmem:[#allocation5 + $0x608] sm:$0xf] }
  0xb7   :  { %v2974_v59 = vor.u32 %v3956_v51, %v2971_v52  ;;  %v4066_v50 = vld [vmem:[#allocation5 + $0x614] sm:$0xf0] }
  0xb8   :  { %1743 = vmatpush.bf16.msra.mxu3 %v3306_v56  ;;  %v3465_v56 = vld [vmem:[#allocation5 + $0x688] sm:$0xf]  ;;  %v3402_v0 = vor.u32 %v4066_v50, %v3401_v49  ;;  %v3984_v50 = vld [vmem:[#allocation5 + $0x38c] sm:$0xf] }
  0xb9   :  { %1705 = vmatpush.bf16.msra.mxu0 %v2906_v62  ;;  %1718 = vmatpush.bf16.msra.mxu1 %v3034_v1  ;;  %v2827_v62 = vld [vmem:[#allocation5 + $0x198] sm:$0xf0]  ;;  %v3466_v1 = vor.u32 %v4082_v57, %v3465_v56  ;;  %v3904_v56 = vld [vmem:[#allocation5 + $0x10c] sm:$0xf]  ;;  %v2910_v57 = vor.u32 %v3940_v45, %v2907_v46 }
  0xba   :  { %1731 = vmatpush.bf16.msra.mxu2 %v3162_v2  ;;  %v2702_v2 = vor.u32 %v3888_v58, %v2699_v60  ;;  %v2830_v3 = vor.u32 %v3920_v61, %v2827_v62  ;;  %v2763_v58 = vld [vmem:[#allocation5 + $0x118] sm:$0xf0]  ;;  %v3996_v61 = vld [vmem:[#allocation5 + $0x3ec] sm:$0xf] }
  0xbb   :  { %v2891_v60 = vld [vmem:[#allocation5 + $0x218] sm:$0xf0] }
  0xbc   :  { %1744 = vmatpush.bf16.msra.mxu3 %v3290_v6  ;;  %v3884_v6 = vld [vmem:[#allocation5 + $0x6c] sm:$0xf]  ;;  %v4491_v17 = vpop.f32.mrf.mxu0  ;;  %v3131_v62 = vld [vmem:[#allocation5 + $0x3f8] sm:$0xf0] }
  0xbd   :  { %1706 = vmatpush.bf16.msra.mxu0 %v2890_v16  ;;  %1719 = vmatpush.bf16.msra.mxu1 %v3018_v20  ;;  %v3450_v16 = vor.u32 %v4078_v5, %v3449_v4  ;;  %v2686_v18 = vor.u32 %v3884_v6, %v2683_v10  ;;  %v3433_v20 = vld [vmem:[#allocation5 + $0x648] sm:$0xf]  ;;  %v2766_v6 = vor.u32 %v3904_v56, %v2763_v58  ;;  %v3515_v10 = vld [vmem:[#allocation5 + $0x6f8] sm:$0xf0]  ;;  %v4080_v56 = vld [vmem:[#allocation5 + $0x68c] sm:$0xf] }
  0xbe   :  { %1732 = vmatpush.bf16.msra.mxu2 %v3146_v21  ;;  %v4074_v21 = vld [vmem:[#allocation5 + $0x654] sm:$0xf0]  ;;  %v3134_v12 = vor.u32 %v3996_v61, %v3131_v62  ;;  %v3483_v45 = vld [vmem:[#allocation5 + $0x6b8] sm:$0xf0]  ;;  %v3980_v61 = vld [vmem:[#allocation5 + $0x36c] sm:$0xf] }
  0xbf   :  { %v3434_v30 = vor.u32 %v4074_v21, %v3433_v20  ;;  %v4024_v20 = vld [vmem:[#allocation5 + $0x4cc] sm:$0xf]  ;;  %v3067_v62 = vld [vmem:[#allocation5 + $0x378] sm:$0xf0] }
  0xc0   :  { %1745 = vmatpush.bf16.msra.mxu3 %v3274_v24  ;;  %1707 = vmatmul.bf16.vlgmr.msra.gmra.mxu0 %v4457_v8  ;;  %v2667_v24 = vld [vmem:[#allocation5 + $0x58] sm:$0xf0] }
  0xc1   :  { %1751 = vmatpush.bf16.msrb.mxu0 %v3514_v26  ;;  %1764 = vmatpush.bf16.msrb.mxu1 %v2750_v27  ;;  %v3912_v26 = vld [vmem:[#allocation5 + $0x14c] sm:$0xf]  ;;  %v2795_v27 = vld [vmem:[#allocation5 + $0x158] sm:$0xf0] }
  0xc2   :  { %1777 = vmatpush.bf16.msrb.mxu2 %v2878_v28  ;;  %1720 = vmatmul.bf16.vlgmr.msra.gmra.mxu1 %v4461_v15  ;;  %v3944_v28 = vld [vmem:[#allocation5 + $0x24c] sm:$0xf]  ;;  %v2798_v34 = vor.u32 %v3912_v26, %v2795_v27  ;;  %v3371_v26 = vld [vmem:[#allocation5 + $0x5d8] sm:$0xf0] }
  0xc3   :  { %1733 = vmatmul.bf16.vlgmr.msra.gmra.mxu2 %v4471_v36  ;;  %1746 = vmatmul.bf16.vlgmr.msra.gmra.mxu3 %v4473_v37  ;;  %v2926_v40 = vor.u32 %v3944_v28, %v2923_v29  ;;  %v4088_v27 = vld [vmem:[#allocation5 + $0x6cc] sm:$0xf]  ;;  %v3499_v28 = vld [vmem:[#allocation5 + $0x6d8] sm:$0xf0] }
  0xc4   :  { %1790 = vmatpush.bf16.msrb.mxu3 %v3006_v32  ;;  %v2670_v32 = vor.u32 %v3880_v22, %v2667_v24  ;;  %v4495_v44 = vpop.f32.mrf.mxu2  ;;  %v1502_v51 = vpop.f32.mrf.mxu0  ;;  %v4056_v24 = vld [vmem:[#allocation5 + $0x5cc] sm:$0xf] }
  0xc5   :  { %1752 = vmatpush.bf16.msrb.mxu0 %v3498_v41  ;;  %1765 = vmatpush.bf16.msrb.mxu1 %v2734_v42  ;;  %v2651_v41 = vld [vmem:[#allocation5 + $0x38] sm:$0xf0]  ;;  %v3908_v42 = vld [vmem:[#allocation5 + $0x12c] sm:$0xf] }
  0xc6   :  { %1778 = vmatpush.bf16.msrb.mxu2 %v2862_v43  ;;  %v2779_v43 = vld [vmem:[#allocation5 + $0x138] sm:$0xf0]  ;;  %v2654_v52 = vor.u32 %v3876_v39, %v2651_v41  ;;  %v3502_v39 = vor.u32 %v4088_v27, %v3499_v28  ;;  %v4052_v41 = vld [vmem:[#allocation5 + $0x5ac] sm:$0xf] }
  0xc7   :  { %v3083_v51 = vld [vmem:[#allocation5 + $0x398] sm:$0xf0] }
  0xc8   :  { %1791 = vmatpush.bf16.msrb.mxu3 %v2990_v47 }
  0xc9   :  { %1753 = vmatpush.bf16.msrb.mxu0 %v3482_v53  ;;  %1766 = vmatpush.bf16.msrb.mxu1 %v2718_v54  ;;  %v4493_v31 = vpop.f32.mrf.mxu1  ;;  %v2782_v53 = vor.u32 %v3908_v42, %v2779_v43  ;;  %v3872_v54 = vld [vmem:[#allocation5 + $0xc] sm:$0xf]  ;;  %v3355_v42 = vld [vmem:[#allocation5 + $0x5b8] sm:$0xf0] }
  0xca   :  { %1779 = vmatpush.bf16.msrb.mxu2 %v2846_v55  ;;  %v2635_v55 = vld [vmem:[#allocation5 + $0x18] sm:$0xf0]  ;;  %v4084_v43 = vld [vmem:[#allocation5 + $0x6ac] sm:$0xf]  ;;  %v3358_v49 = vor.u32 %v4052_v41, %v3355_v42 }
  0xcb   :  { %v2638_v5 = vor.u32 %v3872_v54, %v2635_v55  ;;  %v3211_v54 = vld [vmem:[#allocation5 + $0x498] sm:$0xf0]  ;;  %v4048_v55 = vld [vmem:[#allocation5 + $0x58c] sm:$0xf] }
  0xcc   :  { %1792 = vmatpush.bf16.msrb.mxu3 %v2974_v59  ;;  %v3936_v59 = vld [vmem:[#allocation5 + $0x20c] sm:$0xf]  ;;  %v1528_v13 = vpop.f32.mrf.mxu2  ;;  %v3291_v41 = vld [vmem:[#allocation5 + $0x538] sm:$0xf0] }
  0xcd   :  { %1754 = vmatpush.bf16.msrb.mxu0 %v3466_v1  ;;  %1767 = vmatpush.bf16.msrb.mxu1 %v2702_v2  ;;  %v3259_v1 = vld [vmem:[#allocation5 + $0x4f8] sm:$0xf0]  ;;  %v4060_v2 = vld [vmem:[#allocation5 + $0x5ec] sm:$0xf]  ;;  %v2894_v11 = vor.u32 %v3936_v59, %v2891_v60 }
  0xce   :  { %1780 = vmatpush.bf16.msrb.mxu2 %v2830_v3  ;;  %v4497_v47 = vpop.f32.mrf.mxu3  ;;  %v3387_v3 = vld [vmem:[#allocation5 + $0x5f8] sm:$0xf0]  ;;  %v3262_v14 = vor.u32 %v4028_v63, %v3259_v1  ;;  %v4012_v63 = vld [vmem:[#allocation5 + $0x46c] sm:$0xf] }
  0xcf   :  { %v3195_v1 = vld [vmem:[#allocation5 + $0x478] sm:$0xf0]  ;;  %v4008_v13 = vld [vmem:[#allocation5 + $0x44c] sm:$0xf] }
  0xd0   :  { %1793 = vmatpush.bf16.msrb.mxu3 %v2958_v7  ;;  %v4092_v7 = vld [vmem:[#allocation5 + $0x6ec] sm:$0xf] }
  0xd1   :  { %1755 = vmatpush.bf16.msrb.mxu0 %v3450_v16  ;;  %1768 = vmatpush.bf16.msrb.mxu1 %v2686_v18  ;;  %v1515_v4 = vpop.f32.mrf.mxu1  ;;  %v3390_v16 = vor.u32 %v4060_v2, %v3387_v3  ;;  %v3992_v18 = vld [vmem:[#allocation5 + $0x3cc] sm:$0xf]  ;;  %v3518_v22 = vor.u32 %v4092_v7, %v3515_v10  ;;  %v3323_v3 = vld [vmem:[#allocation5 + $0x578] sm:$0xf0]  ;;  %v3198_v7 = vor.u32 %v4012_v63, %v3195_v1  ;;  %v3641_v63 = vld [vmem:[#allocation8 + $0xf0] sm:$0xf] }
  0xd2   :  { %1781 = vmatpush.bf16.msrb.mxu2 %v2814_v19  ;;  %v3115_v19 = vld [vmem:[#allocation5 + $0x3d8] sm:$0xf0]  ;;  %v4044_v2 = vld [vmem:[#allocation5 + $0x56c] sm:$0xf] }
  0xd3   :  { %v3118_v29 = vor.u32 %v3992_v18, %v3115_v19  ;;  %v4076_v4 = vld [vmem:[#allocation5 + $0x66c] sm:$0xf]  ;;  %v3326_v10 = vor.u32 %v4044_v2, %v3323_v3  ;;  %v3179_v18 = vld [vmem:[#allocation5 + $0x458] sm:$0xf0] }
  0xd4   :  { %1794 = vmatpush.bf16.msrb.mxu3 %v2942_v23  ;;  %v3243_v23 = vld [vmem:[#allocation5 + $0x4d8] sm:$0xf0]  ;;  %v4040_v19 = vld [vmem:[#allocation5 + $0x54c] sm:$0xf] }
  0xd5   :  { %1756 = vmatpush.bf16.msrb.mxu0 %v3434_v30  ;;  %1769 = vmatpush.bf16.msrb.mxu1 %v2670_v32  ;;  %v3246_v30 = vor.u32 %v4024_v20, %v3243_v23  ;;  %v3374_v32 = vor.u32 %v4056_v24, %v3371_v26  ;;  %v3307_v20 = vld [vmem:[#allocation5 + $0x558] sm:$0xf0]  ;;  %v4511_v24 = vld [vmem:[#allocation7] sm:$0xf]  ;;  %v4068_v42 = vld [vmem:[#allocation5 + $0x62c] sm:$0xf] }
  0xd6   :  { %1782 = vmatpush.bf16.msrb.mxu2 %v2798_v34  ;;  %v1541_v21 = vpop.f32.mrf.mxu3  ;;  %v3988_v34 = vld [vmem:[#allocation5 + $0x3ac] sm:$0xf] }
  0xd7   :  { %v3102_v46 = vor.u32 %v3988_v34, %v3099_v35  ;;  %v4072_v21 = vld [vmem:[#allocation5 + $0x64c] sm:$0xf]  ;;  %v3035_v34 = vld [vmem:[#allocation5 + $0x338] sm:$0xf0] }
  0xd8   :  { %1795 = vmatpush.bf16.msrb.mxu3 %v2926_v40  ;;  %v3227_v40 = vld [vmem:[#allocation5 + $0x4b8] sm:$0xf0]  ;;  %v4004_v35 = vld [vmem:[#allocation5 + $0x42c] sm:$0xf] }
  0xd9   :  { %1757 = vmatpush.bf16.msrb.mxu0 %v3418_v48  ;;  %1770 = vmatpush.bf16.msrb.mxu1 %v2654_v52  ;;  %v3230_v48 = vor.u32 %v4020_v38, %v3227_v40  ;;  %v4016_v52 = vld [vmem:[#allocation5 + $0x48c] sm:$0xf] }
  0xda   :  { %1783 = vmatpush.bf16.msrb.mxu2 %v2782_v53  ;;  %v3486_v53 = vor.u32 %v4084_v43, %v3483_v45  ;;  %v4036_v40 = vld [vmem:[#allocation5 + $0x52c] sm:$0xf]  ;;  %v3419_v43 = vld [vmem:[#allocation5 + $0x638] sm:$0xf0]  ;;  %v363_v45 = vperm.slane %v4511_v24, 0 }
  0xdc   :  { %1796 = vmatpush.bf16.msrb.mxu3 %v2910_v57  ;;  %v3467_v57 = vld [vmem:[#allocation5 + $0x698] sm:$0xf0] }
  0xdd   :  { %1758 = vmatpush.bf16.msrb.mxu0 %v3402_v0  ;;  %1771 = vmatpush.bf16.msrb.mxu1 %v2638_v5  ;;  %v4503_v58 = vpop.f32.mrf.mxu0  ;;  %v3470_v0 = vor.u32 %v4080_v56, %v3467_v57  ;;  %v3451_v5 = vld [vmem:[#allocation5 + $0x678] sm:$0xf0]  ;;  %v4064_v57 = vld [vmem:[#allocation5 + $0x60c] sm:$0xf] }
  0xde   :  { %1784 = vmatpush.bf16.msrb.mxu2 %v2766_v6  ;;  %v3070_v6 = vor.u32 %v3980_v61, %v3067_v62  ;;  %v3275_v56 = vld [vmem:[#allocation5 + $0x518] sm:$0xf0] }
  0xdf   :  { %v4505_v59 = vpop.f32.mrf.mxu1 }
  0xe0   :  { %1797 = vmatpush.bf16.msrb.mxu3 %v2894_v11  ;;  %1759 = vmatmul.bf16.vlgmr.msrb.gmra.mxu0 %v4469_v33  ;;  %v3976_v11 = vld [vmem:[#allocation5 + $0x34c] sm:$0xf] }
  0xe1   :  { %1803 = vmatpush.bf16.msra.mxu0 %v3134_v12  ;;  %1816 = vmatpush.bf16.msra.mxu1 %v3262_v14  ;;  %v3051_v12 = vld [vmem:[#allocation5 + $0x358] sm:$0xf0] }
  0xe2   :  { %1829 = vmatpush.bf16.msra.mxu2 %v3390_v16  ;;  %1772 = vmatmul.bf16.vlgmr.msrb.gmra.mxu1 %v4459_v9  ;;  %v3214_v9 = vor.u32 %v4016_v52, %v3211_v54  ;;  %v3454_v16 = vor.u32 %v4076_v4, %v3451_v5  ;;  %v3054_v26 = vor.u32 %v3976_v11, %v3051_v12  ;;  %v4000_v52 = vld [vmem:[#allocation5 + $0x40c] sm:$0xf]  ;;  %v3633_v11 = vld [vmem:[#allocation8 + $0xe0] sm:$0xf] }
  0xe3   :  { %1785 = vmatmul.bf16.vlgmr.msrb.gmra.mxu2 %v4466_v25  ;;  %1798 = vmatmul.bf16.vlgmr.msrb.gmra.mxu3 %v4457_v8  ;;  %v3339_v25 = vld [vmem:[#allocation5 + $0x598] sm:$0xf0]  ;;  %v3086_v8 = vor.u32 %v3984_v50, %v3083_v51  ;;  %v3294_v50 = vor.u32 %v4036_v40, %v3291_v41  ;;  %v1501_v5 = vadd.f32 %v4491_v17, %v363_v45  ;;  %v4124_v12 = vld [vmem:[#allocation8 + $0xe4] sm:$0xf0]  ;;  %v3625_v17 = vld [vmem:[#allocation8 + $0xd0] sm:$0xf] }
  0xe4   :  { %1842 = vmatpush.bf16.msra.mxu3 %v3518_v22  ;;  %v3342_v60 = vor.u32 %v4048_v55, %v3339_v25  ;;  %v3435_v22 = vld [vmem:[#allocation5 + $0x658] sm:$0xf0]  ;;  %v3422_v55 = vor.u32 %v4068_v42, %v3419_v43  ;;  %v4032_v25 = vld [vmem:[#allocation5 + $0x50c] sm:$0xf]  ;;  %v3537_v41 = vld [vmem:[#allocation8 + $0x20] sm:$0xf] }
  0xe5   :  { %1804 = vmatpush.bf16.msra.mxu0 %v3118_v29  ;;  %1817 = vmatpush.bf16.msra.mxu1 %v3246_v30  ;;  %v1554_v27 = vpop.f32.mrf.mxu0  ;;  %v3182_v29 = vor.u32 %v4008_v13, %v3179_v18  ;;  %v3310_v30 = vor.u32 %v4040_v19, %v3307_v20  ;;  %v3438_v38 = vor.u32 %v4072_v21, %v3435_v22  ;;  %v3019_v51 = vld [vmem:[#allocation5 + $0x318] sm:$0xf0]  ;;  %v3561_v18 = vld [vmem:[#allocation8 + $0x50] sm:$0xf]  ;;  %v4100_v42 = vld [vmem:[#allocation8 + $0x24] sm:$0xf0] }
  0xe6   :  { %1830 = vmatpush.bf16.msra.mxu2 %v3374_v32  ;;  %v4507_v14 = vpop.f32.mrf.mxu2  ;;  %v4509_v23 = vpop.f32.mrf.mxu3  ;;  %v3972_v32 = vld [vmem:[#allocation5 + $0x32c] sm:$0xf]  ;;  %v3278_v2 = vor.u32 %v4032_v25, %v3275_v56  ;;  %v4106_v19 = vld [vmem:[#allocation8 + $0x54] sm:$0xf0]  ;;  %v3634_v20 = vor.u32 %v4124_v12, %v3633_v11  ;;  %v3593_v25 = vld [vmem:[#allocation8 + $0x90] sm:$0xf] }
  0xe7   :  { %v1567_v28 = vpop.f32.mrf.mxu1  ;;  %v4122_v21 = vld [vmem:[#allocation8 + $0xd4] sm:$0xf0]  ;;  %v3562_v22 = vor.u32 %v4106_v19, %v3561_v18  ;;  %v4104_v27 = vld [vmem:[#allocation8 + $0x44] sm:$0xf0]  ;;  %v3571_v12 = vld [vmem:[#allocation8 + $0x68] sm:$0xf0] }
  0xe8   :  { %1843 = vmatpush.bf16.msra.mxu3 %v3502_v39  ;;  %v3163_v39 = vld [vmem:[#allocation5 + $0x438] sm:$0xf0]  ;;  %v3617_v28 = vld [vmem:[#allocation8 + $0xc0] sm:$0xf]  ;;  %v3635_v18 = vld [vmem:[#allocation8 + $0xe8] sm:$0xf0] }
  0xe9   :  { %1805 = vmatpush.bf16.msra.mxu0 %v3102_v46  ;;  %1818 = vmatpush.bf16.msra.mxu1 %v3230_v48  ;;  %v3038_v46 = vor.u32 %v3972_v32, %v3035_v34  ;;  %v3968_v48 = vld [vmem:[#allocation5 + $0x30c] sm:$0xf]  ;;  %v4102_v34 = vld [vmem:[#allocation8 + $0x34] sm:$0xf0]  ;;  %v3705_v19 = vld [vmem:[#allocation8 + $0x170] sm:$0xf] }
  0xea   :  { %1831 = vmatpush.bf16.msra.mxu2 %v3358_v49  ;;  %v3166_v49 = vor.u32 %v4004_v35, %v3163_v39  ;;  %v3022_v62 = vor.u32 %v3968_v48, %v3019_v51  ;;  %v4118_v39 = vld [vmem:[#allocation8 + $0xb4] sm:$0xf0]  ;;  %v4116_v48 = vld [vmem:[#allocation8 + $0xa4] sm:$0xf0] }
  0xeb   :  { %v4114_v56 = vld [vmem:[#allocation8 + $0x94] sm:$0xf0] }
  0xec   :  { %1844 = vmatpush.bf16.msra.mxu3 %v3486_v53  ;;  %v3147_v53 = vld [vmem:[#allocation5 + $0x418] sm:$0xf0] }
  0xed   :  { %1806 = vmatpush.bf16.msra.mxu0 %v3086_v8  ;;  %1819 = vmatpush.bf16.msra.mxu1 %v3214_v9  ;;  %v3403_v8 = vld [vmem:[#allocation5 + $0x618] sm:$0xf0]  ;;  %v3577_v9 = vld [vmem:[#allocation8 + $0x70] sm:$0xf]  ;;  %v3150_v1 = vor.u32 %v4000_v52, %v3147_v53 }
  0xee   :  { %1832 = vmatpush.bf16.msra.mxu2 %v3342_v60  ;;  %v1580_v54 = vpop.f32.mrf.mxu2  ;;  %v4110_v60 = vld [vmem:[#allocation8 + $0x74] sm:$0xf0]  ;;  %v1593_v61 = vpop.f32.mrf.mxu3  ;;  %v3406_v3 = vor.u32 %v4064_v57, %v3403_v8  ;;  %v3529_v53 = vld [vmem:[#allocation8 + $0x10] sm:$0xf] }
  0xef   :  { %v3578_v4 = vor.u32 %v4110_v60, %v3577_v9  ;;  %v3521_v60 = vld [vmem:[#allocation8] sm:$0xf]  ;;  %v4096_v61 = vld [vmem:[#allocation8 + $0x4] sm:$0xf0] }
  0xf0   :  { %1845 = vmatpush.bf16.msra.mxu3 %v3470_v0  ;;  %v4126_v0 = vld [vmem:[#allocation8 + $0xf4] sm:$0xf0] }
  0xf1   :  { %1807 = vmatpush.bf16.msra.mxu0 %v3070_v6  ;;  %1820 = vmatpush.bf16.msra.mxu1 %v3198_v7  ;;  %v3569_v6 = vld [vmem:[#allocation8 + $0x60] sm:$0xf]  ;;  %v4108_v7 = vld [vmem:[#allocation8 + $0x64] sm:$0xf0] }
  0xf2   :  { %1833 = vmatpush.bf16.msra.mxu2 %v3326_v10  ;;  %v3642_v10 = vor.u32 %v4126_v0, %v3641_v63  ;;  %v3570_v13 = vor.u32 %v4108_v7, %v3569_v6  ;;  %v4109_v63 = vld [vmem:[#allocation8 + $0x74] sm:$0xf]  ;;  %v3522_v7 = vor.u32 %v4096_v61, %v3521_v60  ;;  %v3539_v61 = vld [vmem:[#allocation8 + $0x28] sm:$0xf0] }
  0xf4   :  { %1846 = vmatpush.bf16.msra.mxu3 %v3454_v16  ;;  %v1514_v16 = vadd.f32 %v4493_v31, %v1501_v5  ;;  %v3553_v31 = vld [vmem:[#allocation8 + $0x40] sm:$0xf]  ;;  %v3643_v5 = vld [vmem:[#allocation8 + $0xf8] sm:$0xf0] }
  0xf5   :  { %1808 = vmatpush.bf16.msra.mxu0 %v3054_v26  ;;  %1821 = vmatpush.bf16.msra.mxu1 %v3182_v29  ;;  %v4120_v29 = vld [vmem:[#allocation8 + $0xc4] sm:$0xf0] }
  0xf6   :  { %1834 = vmatpush.bf16.msra.mxu2 %v3310_v30  ;;  %v1527_v26 = vadd.f32 %v4495_v44, %v1514_v16  ;;  %v3554_v30 = vor.u32 %v4104_v27, %v3553_v31  ;;  %v3618_v35 = vor.u32 %v4120_v29, %v3617_v28  ;;  %v4123_v16 = vld [vmem:[#allocation8 + $0xe4] sm:$0xf]  ;;  %v3697_v31 = vld [vmem:[#allocation8 + $0x160] sm:$0xf]  ;;  %v4140_v27 = vld [vmem:[#allocation8 + $0x164] sm:$0xf0] }
  0xf7   :  { %v3563_v28 = vld [vmem:[#allocation8 + $0x58] sm:$0xf0]  ;;  %v3638_v29 = vor.u32 %v4123_v16, %v3635_v18  ;;  %v4130_v16 = vld [vmem:[#allocation8 + $0x114] sm:$0xf0]  ;;  %v4113_v18 = vld [vmem:[#allocation8 + $0x94] sm:$0xf] }
  0xf8   :  { %1847 = vmatpush.bf16.msra.mxu3 %v3438_v38  ;;  %v3609_v38 = vld [vmem:[#allocation8 + $0xb0] sm:$0xf] }
  0xf9   :  { %1809 = vmatpush.bf16.msra.mxu0 %v3038_v46  ;;  %1822 = vmatpush.bf16.msra.mxu1 %v3166_v49  ;;  %v3610_v43 = vor.u32 %v4118_v39, %v3609_v38  ;;  %v364_v49 = vperm.slane %v4511_v24, 1  ;;  %v4103_v38 = vld [vmem:[#allocation8 + $0x44] sm:$0xf]  ;;  %v3555_v39 = vld [vmem:[#allocation8 + $0x48] sm:$0xf0] }
  0xfa   :  { %1835 = vmatpush.bf16.msra.mxu2 %v3294_v50  ;;  %v3538_v50 = vor.u32 %v4100_v42, %v3537_v41  ;;  %v3619_v42 = vld [vmem:[#allocation8 + $0xc8] sm:$0xf0] }
  0xfb   :  { %v1592_v57 = vadd.f32 %v4509_v23, %v364_v49 }
  0xfc   :  { %1848 = vmatpush.bf16.msra.mxu3 %v3422_v55 }
  0xfd   :  { %1810 = vmatpush.bf16.msra.mxu0 %v3022_v62  ;;  %1823 = vmatpush.bf16.msra.mxu1 %v3150_v1  ;;  %v1604_v32 = vpop.f32.mrf.mxu0  ;;  %v3594_v62 = vor.u32 %v4114_v56, %v3593_v25  ;;  %v3585_v1 = vld [vmem:[#allocation8 + $0x80] sm:$0xf]  ;;  %v4134_v25 = vld [vmem:[#allocation8 + $0x134] sm:$0xf0] }
  0xfe   :  { %1836 = vmatpush.bf16.msra.mxu2 %v3278_v2  ;;  %v4112_v2 = vld [vmem:[#allocation8 + $0x84] sm:$0xf0]  ;;  %v1605_v6 = vadd.f32 %v1604_v32, %v1592_v57  ;;  %v3698_v32 = vor.u32 %v4140_v27, %v3697_v31  ;;  %v4117_v57 = vld [vmem:[#allocation8 + $0xb4] sm:$0xf]  ;;  %v4111_v27 = vld [vmem:[#allocation8 + $0x84] sm:$0xf] }
  0xff   :  { %v3586_v11 = vor.u32 %v4112_v2, %v3585_v1  ;;  %v4115_v2 = vld [vmem:[#allocation8 + $0xa4] sm:$0xf] }
 0x100   :  { %1849 = vmatpush.bf16.msra.mxu3 %v3406_v3  ;;  %1811 = vmatmul.bf16.vlgmr.msra.gmra.mxu0 %v4461_v15  ;;  %v3626_v15 = vor.u32 %v4122_v21, %v3625_v17 }
 0x101   :  { %2253 = vmatpush.bf16.msrb.mxu0 %v3578_v4  ;;  %2266 = vmatpush.bf16.msrb.mxu1 %v3642_v10  ;;  %v4125_v4 = vld [vmem:[#allocation8 + $0xf4] sm:$0xf] }
 0x102   :  { %1824 = vmatmul.bf16.vlgmr.msra.gmra.mxu1 %v4471_v36  ;;  %1837 = vmatmul.bf16.vlgmr.msra.gmra.mxu2 %v4473_v37  ;;  %v1540_v36 = vadd.f32 %v4497_v47, %v1527_v26  ;;  %v3545_v37 = vld [vmem:[#allocation8 + $0x30] sm:$0xf]  ;;  %v3601_v47 = vld [vmem:[#allocation8 + $0xa0] sm:$0xf] }
 0x103   :  { %1850 = vmatmul.bf16.vlgmr.msra.gmra.mxu3 %v4469_v33  ;;  %v1617_v33 = vpop.f32.mrf.mxu1  ;;  %v3546_v44 = vor.u32 %v4102_v34, %v3545_v37  ;;  %v3602_v54 = vor.u32 %v4116_v48, %v3601_v47  ;;  %v3689_v37 = vld [vmem:[#allocation8 + $0x150] sm:$0xf]  ;;  %v4138_v34 = vld [vmem:[#allocation8 + $0x154] sm:$0xf0]  ;;  %v4136_v47 = vld [vmem:[#allocation8 + $0x144] sm:$0xf0] }
 0x104   :  { %v1553_v40 = vadd.f32 %v4503_v58, %v1540_v36  ;;  %v4098_v58 = vld [vmem:[#allocation8 + $0x14] sm:$0xf0]  ;;  %v1618_v17 = vadd.f32 %v1617_v33, %v1605_v6  ;;  %v3627_v36 = vld [vmem:[#allocation8 + $0xd8] sm:$0xf0]  ;;  %v3690_v41 = vor.u32 %v4138_v34, %v3689_v37 }
 0x105   :  { %2254 = vmatpush.bf16.msrb.mxu0 %v3570_v13  ;;  %2267 = vmatpush.bf16.msrb.mxu1 %v3634_v20  ;;  %v1606_v51 = vpop.f32.mrf.mxu0  ;;  %v3530_v8 = vor.u32 %v4098_v58, %v3529_v53  ;;  %v3646_v13 = vor.u32 %v4125_v4, %v3643_v5  ;;  %v4142_v20 = vld [vmem:[#allocation8 + $0x174] sm:$0xf0]  ;;  %v3547_v53 = vld [vmem:[#allocation8 + $0x38] sm:$0xf0] }
 0x106   :  { %v4523_v45 = vpop.f32.mrf.mxu2  ;;  %v4525_v46 = vpop.f32.mrf.mxu3  ;;  %v1566_v52 = vadd.f32 %v4505_v59, %v1553_v40  ;;  %v3579_v59 = vld [vmem:[#allocation8 + $0x78] sm:$0xf0]  ;;  %v3706_v21 = vor.u32 %v4142_v20, %v3705_v19  ;;  %v4119_v40 = vld [vmem:[#allocation8 + $0xc4] sm:$0xf] }
 0x107   :  { %v3582_v10 = vor.u32 %v4109_v63, %v3579_v59  ;;  %v3622_v58 = vor.u32 %v4119_v40, %v3619_v42  ;;  %v4132_v59 = vld [vmem:[#allocation8 + $0x124] sm:$0xf0]  ;;  %v3595_v19 = vld [vmem:[#allocation8 + $0x98] sm:$0xf0]  ;;  %v4158_v42 = vld [vmem:[#allocation8 + $0x1f4] sm:$0xf0] }
 0x108   :  { %v1579_v9 = vadd.f32 %v4507_v14, %v1566_v52  ;;  %v4107_v14 = vld [vmem:[#allocation8 + $0x64] sm:$0xf]  ;;  %2279 = vmatpush.bf16.msrb.mxu2 %v3706_v21  ;;  %v3523_v21 = vld [vmem:[#allocation8 + $0x8] sm:$0xf0]  ;;  %v3598_v31 = vor.u32 %v4113_v18, %v3595_v19  ;;  %v3729_v18 = vld [vmem:[#allocation8 + $0x1a0] sm:$0xf] }
 0x109   :  { %2255 = vmatpush.bf16.msrb.mxu0 %v3562_v22  ;;  %2268 = vmatpush.bf16.msrb.mxu1 %v3626_v15  ;;  %v3574_v26 = vor.u32 %v4107_v14, %v3571_v12  ;;  %v4105_v15 = vld [vmem:[#allocation8 + $0x54] sm:$0xf]  ;;  %v4148_v19 = vld [vmem:[#allocation8 + $0x1a4] sm:$0xf0] }
 0x10a   :  { %v1855_v23 = vmax.f32 %v1579_v9, 0.0  ;;  %v3566_v33 = vor.u32 %v4105_v15, %v3563_v28  ;;  %v3649_v15 = vld [vmem:[#allocation8 + $0x100] sm:$0xf]  ;;  %v4128_v28 = vld [vmem:[#allocation8 + $0x104] sm:$0xf0] }
 0x10b   :  { %v1619_v55 = vpop.f32.mrf.mxu1 }
 0x10c   :  { %v4531_v22 = vpack.c.bf16 %v1855_v23, %v1855_v23  ;;  %2280 = vmatpush.bf16.msrb.mxu2 %v3698_v32  ;;  %v3673_v55 = vld [vmem:[#allocation8 + $0x130] sm:$0xf]  ;;  %v4097_v23 = vld [vmem:[#allocation8 + $0x14] sm:$0xf] }
 0x10d   :  { %2256 = vmatpush.bf16.msrb.mxu0 %v3554_v30  ;;  %2269 = vmatpush.bf16.msrb.mxu1 %v3618_v35  ;;  %v4121_v30 = vld [vmem:[#allocation8 + $0xd4] sm:$0xf]  ;;  %v1631_v35 = vadd.f32 %v4523_v45, %v1618_v17  ;;  %v4095_v17 = vld [vmem:[#allocation8 + $0x4] sm:$0xf] }
 0x10e   :  { %v1632_v0 = vpop.f32.mrf.mxu2  ;;  %v1645_v3 = vpop.f32.mrf.mxu3  ;;  %v4101_v45 = vld [vmem:[#allocation8 + $0x34] sm:$0xf]  ;;  %v3526_v37 = vor.u32 %v4095_v17, %v3523_v21  ;;  %v4127_v17 = vld [vmem:[#allocation8 + $0x104] sm:$0xf]  ;;  %v3651_v21 = vld [vmem:[#allocation8 + $0x108] sm:$0xf0] }
 0x10f   :  { %v1644_v48 = vadd.f32 %v4525_v46, %v1631_v35  ;;  %v3550_v9 = vor.u32 %v4101_v45, %v3547_v53  ;;  %v4099_v46 = vld [vmem:[#allocation8 + $0x24] sm:$0xf]  ;;  %v3665_v0 = vld [vmem:[#allocation8 + $0x120] sm:$0xf]  ;;  %v3603_v3 = vld [vmem:[#allocation8 + $0xa8] sm:$0xf0]  ;;  %v3650_v35 = vor.u32 %v4128_v28, %v3649_v15 }
 0x110   :  { %2281 = vmatpush.bf16.msrb.mxu2 %v3690_v41  ;;  %v3542_v5 = vor.u32 %v4099_v46, %v3539_v61  ;;  %v3666_v14 = vor.u32 %v4132_v59, %v3665_v0  ;;  %v3606_v12 = vor.u32 %v4115_v2, %v3603_v3  ;;  %v4141_v32 = vld [vmem:[#allocation8 + $0x174] sm:$0xf]  ;;  %v3769_v41 = vld [vmem:[#allocation8 + $0x1f0] sm:$0xf]  ;;  %v4135_v45 = vld [vmem:[#allocation8 + $0x144] sm:$0xf] }
 0x111   :  { %2257 = vmatpush.bf16.msrb.mxu0 %v3546_v44  ;;  %2270 = vmatpush.bf16.msrb.mxu1 %v3610_v43  ;;  %v3630_v44 = vor.u32 %v4121_v30, %v3627_v36  ;;  %v3681_v43 = vld [vmem:[#allocation8 + $0x140] sm:$0xf]  ;;  %v3707_v36 = vld [vmem:[#allocation8 + $0x178] sm:$0xf0]  ;;  %v4131_v0 = vld [vmem:[#allocation8 + $0x124] sm:$0xf] }
 0x112   :  { %v3745_v46 = vld [vmem:[#allocation8 + $0x1c0] sm:$0xf]  ;;  %v3667_v59 = vld [vmem:[#allocation8 + $0x128] sm:$0xf0]  ;;  %v3721_v28 = vld [vmem:[#allocation8 + $0x190] sm:$0xf] }
 0x115   :  { %2258 = vmatpush.bf16.msrb.mxu0 %v3538_v50  ;;  %2271 = vmatpush.bf16.msrb.mxu1 %v3602_v54  ;;  %v3558_v50 = vor.u32 %v4103_v38, %v3555_v39  ;;  %v3682_v54 = vor.u32 %v4136_v47, %v3681_v43  ;;  %v3710_v38 = vor.u32 %v4141_v32, %v3707_v36  ;;  %v4139_v39 = vld [vmem:[#allocation8 + $0x164] sm:$0xf]  ;;  %v4137_v43 = vld [vmem:[#allocation8 + $0x154] sm:$0xf]  ;;  %v4144_v32 = vld [vmem:[#allocation8 + $0x184] sm:$0xf0] }
 0x116   :  { %v3770_v47 = vor.u32 %v4158_v42, %v3769_v41 }
 0x117   :  { %2282 = vmatpush.bf16.msrb.mxu2 %v3682_v54  ;;  %v3683_v54 = vld [vmem:[#allocation8 + $0x148] sm:$0xf0] }
 0x118   :  { %2292 = vmatpush.bf16.msrb.mxu3 %v3770_v47 }
 0x119   :  { %2259 = vmatpush.bf16.msrb.mxu0 %v3530_v8  ;;  %2272 = vmatpush.bf16.msrb.mxu1 %v3594_v62  ;;  %v3611_v8 = vld [vmem:[#allocation8 + $0xb8] sm:$0xf0]  ;;  %v3674_v62 = vor.u32 %v4134_v25, %v3673_v55  ;;  %v3686_v55 = vor.u32 %v4135_v45, %v3683_v54  ;;  %v3753_v25 = vld [vmem:[#allocation8 + $0x1d0] sm:$0xf]  ;;  %v3747_v54 = vld [vmem:[#allocation8 + $0x1c8] sm:$0xf0] }
 0x11a   :  { %v3614_v63 = vor.u32 %v4117_v57, %v3611_v8  ;;  %v4133_v57 = vld [vmem:[#allocation8 + $0x134] sm:$0xf] }
 0x11b   :  { %2283 = vmatpush.bf16.msrb.mxu2 %v3674_v62 }
 0x11d   :  { %2260 = vmatpush.bf16.msrb.mxu0 %v3522_v7  ;;  %2273 = vmatpush.bf16.msrb.mxu1 %v3586_v11  ;;  %v1656_v49 = vpop.f32.mrf.mxu0 }
 0x11e   :  { %v1657_v51 = vadd.f32 %v1656_v49, %v1644_v48  ;;  %v3691_v48 = vld [vmem:[#allocation8 + $0x158] sm:$0xf0] }
 0x11f   :  { %v1669_v52 = vpop.f32.mrf.mxu1  ;;  %2284 = vmatpush.bf16.msrb.mxu2 %v3666_v14  ;;  %v3694_v49 = vor.u32 %v4137_v43, %v3691_v48  ;;  %v3659_v14 = vld [vmem:[#allocation8 + $0x118] sm:$0xf0]  ;;  %v4153_v48 = vld [vmem:[#allocation8 + $0x1d4] sm:$0xf] }
 0x120   :  { %2261 = vmatmul.bf16.vlgmr.msrb.gmra.mxu0 %v4531_v22  ;;  %v1670_v56 = vadd.f32 %v1669_v52, %v1657_v51  ;;  %v3761_v51 = vld [vmem:[#allocation8 + $0x1e0] sm:$0xf]  ;;  %v4156_v52 = vld [vmem:[#allocation8 + $0x1e4] sm:$0xf0] }
 0x121   :  { %2305 = vmatpush.bf16.msra.mxu0 %v3582_v10  ;;  %2318 = vmatpush.bf16.msra.mxu1 %v3646_v13  ;;  %v3531_v10 = vld [vmem:[#allocation8 + $0x18] sm:$0xf0]  ;;  %v3657_v13 = vld [vmem:[#allocation8 + $0x110] sm:$0xf] }
 0x122   :  { %v1856_v60 = vmax.f32 %v1670_v56, 0.0  ;;  %v3534_v20 = vor.u32 %v4097_v23, %v3531_v10  ;;  %v4154_v56 = vld [vmem:[#allocation8 + $0x1d4] sm:$0xf0] }
 0x123   :  { %v4150_v23 = vld [vmem:[#allocation8 + $0x1b4] sm:$0xf0] }
 0x124   :  { %v1860_v1 = vpack.c.bf16 %v1856_v60, %v1856_v60  ;;  %v3675_v60 = vld [vmem:[#allocation8 + $0x138] sm:$0xf0] }
 0x125   :  { %2306 = vmatpush.bf16.msra.mxu0 %v3574_v26  ;;  %2319 = vmatpush.bf16.msra.mxu1 %v3638_v29  ;;  %v1658_v7 = vpop.f32.mrf.mxu0  ;;  %v3658_v26 = vor.u32 %v4130_v16, %v3657_v13  ;;  %v3587_v29 = vld [vmem:[#allocation8 + $0x88] sm:$0xf0]  ;;  %v3678_v62 = vor.u32 %v4133_v57, %v3675_v60 }
 0x126   :  { %v4536_v4 = vpop.f32.mrf.mxu2  ;;  %v4538_v6 = vpop.f32.mrf.mxu3  ;;  %2274 = vmatmul.bf16.vlgmr.msrb.gmra.mxu1 %v1860_v1  ;;  %v3737_v7 = vld [vmem:[#allocation8 + $0x1b0] sm:$0xf] }
 0x127   :  { %v1671_v11 = vpop.f32.mrf.mxu1  ;;  %2285 = vmatpush.bf16.msrb.mxu2 %v3658_v26  ;;  %v3730_v26 = vor.u32 %v4148_v19, %v3729_v18 }
 0x128   :  { %v4129_v11 = vld [vmem:[#allocation8 + $0x114] sm:$0xf] }
 0x129   :  { %2307 = vmatpush.bf16.msra.mxu0 %v3566_v33  ;;  %2320 = vmatpush.bf16.msra.mxu1 %v3630_v44  ;;  %v3590_v33 = vor.u32 %v4111_v27, %v3587_v29  ;;  %v3699_v44 = vld [vmem:[#allocation8 + $0x168] sm:$0xf0]  ;;  %v3662_v16 = vor.u32 %v4129_v11, %v3659_v14  ;;  %v3654_v27 = vor.u32 %v4127_v17, %v3651_v21  ;;  %v4146_v29 = vld [vmem:[#allocation8 + $0x194] sm:$0xf0] }
 0x12a   :  { %v3702_v40 = vor.u32 %v4139_v39, %v3699_v44  ;;  %v4155_v44 = vld [vmem:[#allocation8 + $0x1e4] sm:$0xf] }
 0x12b   :  { %2286 = vmatpush.bf16.msrb.mxu2 %v3650_v35  ;;  %v3771_v35 = vld [vmem:[#allocation8 + $0x1f8] sm:$0xf0] }
 0x12d   :  { %2308 = vmatpush.bf16.msra.mxu0 %v3558_v50  ;;  %2321 = vmatpush.bf16.msra.mxu1 %v3622_v58  ;;  %v3762_v58 = vor.u32 %v4156_v52, %v3761_v51 }
 0x12e   :  { %v1684_v30 = vpop.f32.mrf.mxu2  ;;  %v1697_v34 = vpop.f32.mrf.mxu3 }
 0x12f   :  { %2331 = vmatpush.bf16.msra.mxu2 %v3710_v38  ;;  %2293 = vmatpush.bf16.msrb.mxu3 %v3762_v58  ;;  %v3713_v30 = vld [vmem:[#allocation8 + $0x180] sm:$0xf]  ;;  %v4157_v34 = vld [vmem:[#allocation8 + $0x1f4] sm:$0xf]  ;;  %v4151_v58 = vld [vmem:[#allocation8 + $0x1c4] sm:$0xf] }
 0x130   :  { %v3714_v36 = vor.u32 %v4144_v32, %v3713_v30 }
 0x131   :  { %2309 = vmatpush.bf16.msra.mxu0 %v3550_v9  ;;  %2322 = vmatpush.bf16.msra.mxu1 %v3614_v63  ;;  %v3754_v9 = vor.u32 %v4154_v56, %v3753_v25  ;;  %v4152_v63 = vld [vmem:[#allocation8 + $0x1c4] sm:$0xf0]  ;;  %v4149_v25 = vld [vmem:[#allocation8 + $0x1b4] sm:$0xf]  ;;  %v3739_v56 = vld [vmem:[#allocation8 + $0x1b8] sm:$0xf0] }
 0x132   :  { %v3742_v57 = vor.u32 %v4149_v25, %v3739_v56  ;;  %v4168_v25 = vld [vmem:[#allocation10 + $0x48] sm:$0xff] }
 0x133   :  { %2332 = vmatpush.bf16.msra.mxu2 %v3702_v40  ;;  %2294 = vmatpush.bf16.msrb.mxu3 %v3754_v9  ;;  %v3763_v40 = vld [vmem:[#allocation8 + $0x1e8] sm:$0xf0] }
 0x134   :  { %v3766_v42 = vor.u32 %v4155_v44, %v3763_v40  ;;  %v3731_v9 = vld [vmem:[#allocation8 + $0x1a8] sm:$0xf0]  ;;  %v4166_v44 = vld [vmem:[#allocation10 + $0x38] sm:$0xff]  ;;  %v4165_v40 = vld [vmem:[#allocation10 + $0x30] sm:$0xff] }
 0x135   :  { %2310 = vmatpush.bf16.msra.mxu0 %v3542_v5  ;;  %2323 = vmatpush.bf16.msra.mxu1 %v3606_v12  ;;  %v3670_v5 = vor.u32 %v4131_v0, %v3667_v59  ;;  %v3738_v12 = vor.u32 %v4150_v23, %v3737_v7  ;;  %v366_v0 = vperm.slane %v4511_v24, 3 }
 0x137   :  { %2333 = vmatpush.bf16.msra.mxu2 %v3694_v49  ;;  %v3755_v49 = vld [vmem:[#allocation8 + $0x1d8] sm:$0xf0] }
 0x138   :  { %v3758_v51 = vor.u32 %v4153_v48, %v3755_v49  ;;  %v4162_v48 = vld [vmem:[#allocation10 + $0x18] sm:$0xff]  ;;  %v4161_v49 = vld [vmem:[#allocation10 + $0x10] sm:$0xff] }
 0x139   :  { %2311 = vmatpush.bf16.msra.mxu0 %v3534_v20  ;;  %2324 = vmatpush.bf16.msra.mxu1 %v3598_v31 }
 0x13b   :  { %2334 = vmatpush.bf16.msra.mxu2 %v3686_v55  ;;  %v3750_v55 = vor.u32 %v4151_v58, %v3747_v54  ;;  %v4171_v58 = vld [vmem:[#allocation10 + $0x60] sm:$0xff]  ;;  %v4170_v54 = vld [vmem:[#allocation10 + $0x58] sm:$0xff] }
 0x13d   :  { %2312 = vmatpush.bf16.msra.mxu0 %v3526_v37  ;;  %2325 = vmatpush.bf16.msra.mxu1 %v3590_v33  ;;  %v1708_v50 = vpop.f32.mrf.mxu0  ;;  %v3774_v33 = vor.u32 %v4157_v34, %v3771_v35 }
 0x13f   :  { %v1721_v53 = vpop.f32.mrf.mxu1  ;;  %2335 = vmatpush.bf16.msra.mxu2 %v3678_v62  ;;  %v4145_v62 = vld [vmem:[#allocation8 + $0x194] sm:$0xf] }
 0x140   :  { %2313 = vmatmul.bf16.vlgmr.msra.gmra.mxu0 %v4531_v22  ;;  %2326 = vmatmul.bf16.vlgmr.msra.gmra.mxu1 %v1860_v1  ;;  %v365_v22 = vperm.slane %v4511_v24, 2  ;;  %v3746_v1 = vor.u32 %v4152_v63, %v3745_v46  ;;  %v3723_v63 = vld [vmem:[#allocation8 + $0x198] sm:$0xf0] }
 0x141   :  { %v3726_v59 = vor.u32 %v4145_v62, %v3723_v63  ;;  %2493 = vmatpush.bf16.msrb.mxu0 %v4166_v44 }
 0x142   :  { %v1683_v2 = vadd.f32 %v4536_v4, %v365_v22  ;;  %2295 = vmatpush.bf16.msrb.mxu3 %v3746_v1  ;;  %v4143_v1 = vld [vmem:[#allocation8 + $0x184] sm:$0xf] }
 0x143   :  { %2336 = vmatpush.bf16.msra.mxu2 %v3670_v5 }
 0x144   :  { %v1696_v13 = vadd.f32 %v4538_v6, %v1683_v2  ;;  %v3722_v6 = vor.u32 %v4146_v29, %v3721_v28  ;;  %v3715_v2 = vld [vmem:[#allocation8 + $0x188] sm:$0xf0] }
 0x145   :  { %v1710_v3 = vpop.f32.mrf.mxu0  ;;  %v3718_v5 = vor.u32 %v4143_v1, %v3715_v2  ;;  %2494 = vmatpush.bf16.msrb.mxu0 %v4165_v40 }
 0x146   :  { %v1734_v8 = vpop.f32.mrf.mxu2  ;;  %v1747_v61 = vpop.f32.mrf.mxu3  ;;  %2296 = vmatpush.bf16.msrb.mxu3 %v3738_v12  ;;  %v1709_v31 = vadd.f32 %v1708_v50, %v1696_v13 }
 0x147   :  { %v1723_v10 = vpop.f32.mrf.mxu1  ;;  %2337 = vmatpush.bf16.msra.mxu2 %v3662_v16 }
 0x148   :  { %v1722_v15 = vadd.f32 %v1721_v53, %v1709_v31 }
 0x14a   :  { %2297 = vmatpush.bf16.msrb.mxu3 %v3730_v26  ;;  %v1735_v37 = vadd.f32 %v1734_v8, %v1722_v15  ;;  %v4147_v8 = vld [vmem:[#allocation8 + $0x1a4] sm:$0xf] }
 0x14b   :  { %2338 = vmatpush.bf16.msra.mxu2 %v3654_v27  ;;  %v1927_v27 = vld [vmem:[%s4561_s4] sm:$0x3] }
 0x14c   :  { %v1748_v38 = vadd.f32 %v1747_v61, %v1735_v37  ;;  %v3734_v61 = vor.u32 %v4147_v8, %v3731_v9  ;;  %v1929_v28 = vperm.slane %v1927_v27, 0  ;;  %v4182_v8 = vld [vmem:[#allocation11 + $0x38] sm:$0xff]  ;;  %v4181_v9 = vld [vmem:[#allocation11 + $0x30] sm:$0xff] }
 0x14e   :  { %v1736_v20 = vpop.f32.mrf.mxu2  ;;  %v1749_v4 = vpop.f32.mrf.mxu3  ;;  %2298 = vmatpush.bf16.msrb.mxu3 %v3722_v6 }
 0x152   :  { %2299 = vmatpush.bf16.msrb.mxu3 %v3714_v36  ;;  %v1930_v36 = vperm.slane %v1927_v27, 1 }
 0x156   :  { %2344 = vmatpush.bf16.msra.mxu3 %v3774_v33 }
 0x15a   :  { %2345 = vmatpush.bf16.msra.mxu3 %v3766_v42  ;;  %v4163_v42 = vld [vmem:[#allocation10 + $0x20] sm:$0xff] }
 0x15d   :  { %v1760_v39 = vpop.f32.mrf.mxu0 }
 0x15e   :  { %v1761_v41 = vadd.f32 %v1760_v39, %v1748_v38  ;;  %2346 = vmatpush.bf16.msra.mxu3 %v3758_v51  ;;  %v4160_v51 = vld [vmem:[#allocation10 + $0x8] sm:$0xff] }
 0x15f   :  { %v1773_v43 = vpop.f32.mrf.mxu1 }
 0x160   :  { %v1857_v47 = vmax.f32 %v1761_v41, 0.0  ;;  %v1774_v3 = vadd.f32 %v1773_v43, %v366_v0  ;;  %v4164_v41 = vld [vmem:[#allocation10 + $0x28] sm:$0xff]  ;;  %v4174_v43 = vld [vmem:[#allocation10 + $0x78] sm:$0xff] }
 0x161   :  { %2495 = vmatpush.bf16.msrb.mxu0 %v4164_v41  ;;  %2506 = vmatpush.bf16.msrb.mxu1 %v4174_v43 }
 0x162   :  { %v1861_v50 = vpack.c.bf16 %v1857_v47, %v1857_v47  ;;  %2347 = vmatpush.bf16.msra.mxu3 %v3750_v55  ;;  %v4173_v47 = vld [vmem:[#allocation10 + $0x70] sm:$0xff] }
 0x163   :  { %v4169_v55 = vld [vmem:[#allocation10 + $0x50] sm:$0xff] }
 0x164   :  { %2287 = vmatmul.bf16.vlgmr.msrb.gmra.mxu2 %v1861_v50 }
 0x165   :  { %v1762_v53 = vpop.f32.mrf.mxu0  ;;  %2496 = vmatpush.bf16.msrb.mxu0 %v4163_v42  ;;  %2507 = vmatpush.bf16.msrb.mxu1 %v4173_v47 }
 0x166   :  { %v1786_v52 = vpop.f32.mrf.mxu2  ;;  %v1799_v45 = vpop.f32.mrf.mxu3  ;;  %2348 = vmatpush.bf16.msra.mxu3 %v3742_v57  ;;  %v4159_v53 = vld [vmem:[#allocation10] sm:$0xff]  ;;  %2589 = vmatpush.bf16.msrb.mxu2 %v4182_v8 }
 0x167   :  { %v1775_v22 = vpop.f32.mrf.mxu1  ;;  %v1787_v7 = vadd.f32 %v1786_v52, %v1774_v3  ;;  %v4172_v52 = vld [vmem:[#allocation10 + $0x68] sm:$0xff]  ;;  %v4167_v57 = vld [vmem:[#allocation10 + $0x40] sm:$0xff] }
 0x169   :  { %v1800_v23 = vadd.f32 %v1799_v45, %v1787_v7  ;;  %2497 = vmatpush.bf16.msrb.mxu0 %v4162_v48  ;;  %2508 = vmatpush.bf16.msrb.mxu1 %v4172_v52 }
 0x16a   :  { %2349 = vmatpush.bf16.msra.mxu3 %v3734_v61  ;;  %2590 = vmatpush.bf16.msrb.mxu2 %v4181_v9 }
 0x16d   :  { %2498 = vmatpush.bf16.msrb.mxu0 %v4161_v49  ;;  %2509 = vmatpush.bf16.msrb.mxu1 %v4171_v58 }
 0x16e   :  { %v1788_v60 = vpop.f32.mrf.mxu2  ;;  %v1801_v46 = vpop.f32.mrf.mxu3  ;;  %2350 = vmatpush.bf16.msra.mxu3 %v3726_v59 }
 0x171   :  { %2499 = vmatpush.bf16.msrb.mxu0 %v4160_v51  ;;  %2510 = vmatpush.bf16.msrb.mxu1 %v4170_v54 }
 0x172   :  { %2351 = vmatpush.bf16.msra.mxu3 %v3718_v5 }
 0x174   :  { %2339 = vmatmul.bf16.vlgmr.msra.gmra.mxu2 %v1861_v50 }
 0x175   :  { %2500 = vmatpush.bf16.msrb.mxu0 %v4159_v53  ;;  %2511 = vmatpush.bf16.msrb.mxu1 %v4169_v55 }
 0x179   :  { %2512 = vmatpush.bf16.msrb.mxu1 %v4168_v25 }
 0x17d   :  { %v1812_v10 = vpop.f32.mrf.mxu0  ;;  %2513 = vmatpush.bf16.msrb.mxu1 %v4167_v57 }
 0x17e   :  { %v1813_v14 = vadd.f32 %v1812_v10, %v1800_v23  ;;  %v4180_v23 = vld [vmem:[#allocation11 + $0x28] sm:$0xff]  ;;  %v4179_v10 = vld [vmem:[#allocation11 + $0x20] sm:$0xff] }
 0x17f   :  { %v1825_v11 = vpop.f32.mrf.mxu1  ;;  %2591 = vmatpush.bf16.msrb.mxu2 %v4180_v23 }
 0x180   :  { %v1826_v12 = vadd.f32 %v1825_v11, %v1813_v14  ;;  %v4178_v11 = vld [vmem:[#allocation11 + $0x18] sm:$0xff]  ;;  %v4177_v14 = vld [vmem:[#allocation11 + $0x10] sm:$0xff] }
 0x183   :  { %2592 = vmatpush.bf16.msrb.mxu2 %v4179_v10 }
 0x185   :  { %v1838_v13 = vpop.f32.mrf.mxu2  ;;  %v1814_v19 = vpop.f32.mrf.mxu0 }
 0x186   :  { %v1839_v16 = vadd.f32 %v1838_v13, %v1826_v12  ;;  %v1851_v18 = vpop.f32.mrf.mxu3  ;;  %v4176_v12 = vld [vmem:[#allocation11 + $0x8] sm:$0xff]  ;;  %v4175_v13 = vld [vmem:[#allocation11] sm:$0xff] }
 0x187   :  { %v1827_v24 = vpop.f32.mrf.mxu1  ;;  %2593 = vmatpush.bf16.msrb.mxu2 %v4178_v11  ;;  %v4196_v19 = vld [vmem:[%s4563_s6] ss:$0 sm:$0xff] }
 0x188   :  { %v1852_v20 = vadd.f32 %v1851_v18, %v1839_v16 }
 0x18a   :  { %v1858_v17 = vmax.f32 %v1852_v20, 0.0 }
 0x18b   :  { %2594 = vmatpush.bf16.msrb.mxu2 %v4177_v14 }
 0x18c   :  { %v1862_v21 = vpack.c.bf16 %v1858_v17, %v1858_v17 }
 0x18d   :  { %v1840_v4 = vpop.f32.mrf.mxu2 }
 0x18e   :  { %v1853_v26 = vpop.f32.mrf.mxu3  ;;  %2300 = vmatmul.bf16.vlgmr.msrb.gmra.mxu3 %v1862_v21 }
 0x18f   :  { %2595 = vmatpush.bf16.msrb.mxu2 %v4176_v12 }
 0x193   :  { %2596 = vmatpush.bf16.msrb.mxu2 %v4175_v13 }
 0x19d   :  { %v2262_v31 = vpop.f32.mrf.mxu0 }
 0x19e   :  { %2352 = vmatmul.bf16.vlgmr.msra.gmra.mxu3 %v1862_v21  ;;  %v2263_v29 = vadd.f32 %v2262_v31, %v1929_v28  ;;  %v4197_v31 = vld [vmem:[%s4565_s8] ss:$0 sm:$0xff] }
 0x1a3   :  { %v2275_v30 = vpop.f32.mrf.mxu1 }
 0x1a4   :  { %v2276_v6 = vadd.f32 %v2275_v30, %v2263_v29 }
 0x1a5   :  { %v2264_v15 = vpop.f32.mrf.mxu0 }
 0x1ab   :  { %v2277_v32 = vpop.f32.mrf.mxu1 }
 0x1bd   :  { %v2314_v37 = vpop.f32.mrf.mxu0  ;;  %v2327_v35 = vpop.f32.mrf.mxu1 }
 0x1be   :  { %v2315_v34 = vadd.f32 %v2314_v37, %v1930_v36 }
 0x1c0   :  { %v2328_v33 = vadd.f32 %v2327_v35, %v2315_v34 }
 0x1c5   :  { %v2316_v38 = vpop.f32.mrf.mxu0  ;;  %v2329_v39 = vpop.f32.mrf.mxu1 }
 0x1e7   :  { %v2288_v50 = vpop.f32.mrf.mxu2 }
 0x1e8   :  { %v2289_v60 = vadd.f32 %v2288_v50, %v2276_v6 }
 0x1ef   :  { %v2290_v45 = vpop.f32.mrf.mxu2 }
 0x1f7   :  { %v2340_v22 = vpop.f32.mrf.mxu2 }
 0x1f8   :  { %v2341_v59 = vadd.f32 %v2340_v22, %v2328_v33 }
 0x1ff   :  { %v2342_v56 = vpop.f32.mrf.mxu2 }
 0x211   :  { %v2301_v46 = vpop.f32.mrf.mxu3 }
 0x212   :  { %v2302_v61 = vadd.f32 %v2301_v46, %v2289_v60 }
 0x214   :  { %v2357_v62 = vmax.f32 %v2302_v61, 0.0 }
 0x216   :  { %v2359_v63 = vpack.c.bf16 %v2357_v62, %v2357_v62 }
 0x218   :  { %2501 = vmatmul.bf16.vlgmr.msrb.gmra.mxu0 %v2359_v63 }
 0x219   :  { %v2303_v0 = vpop.f32.mrf.mxu3 }
 0x221   :  { %v2353_v1 = vpop.f32.mrf.mxu3 }
 0x222   :  { %v2354_v2 = vadd.f32 %v2353_v1, %v2341_v59 }
 0x224   :  { %v2358_v3 = vmax.f32 %v2354_v2, 0.0 }
 0x226   :  { %v2360_v5 = vpack.c.bf16 %v2358_v3, %v2358_v3 }
 0x228   :  { %2514 = vmatmul.bf16.vlgmr.msrb.gmra.mxu1 %v2360_v5 }
 0x229   :  { %v2355_v7 = vpop.f32.mrf.mxu3 }
 0x295   :  { %v2502_v16 = vpop.f32.mrf.mxu0 }
 0x296   :  { %v2503_v24 = vadd.f32 %v4196_v19, %v2502_v16 }
 0x29d   :  { %v2504_v18 = vpop.f32.mrf.mxu0 }
 0x2a5   :  { %v2515_v20 = vpop.f32.mrf.mxu1 }
 0x2a6   :  { %v2516_v17 = vadd.f32 %v2515_v20, %v2503_v24 }
 0x2a8   :  { %v2519_v21 = vmax.f32 %v2516_v17, 0.0 }
 0x2aa   :  { %v2520_v4 = vpack.c.bf16 %v2519_v21, %v2519_v21 }
 0x2ac   :  { %2597 = vmatmul.bf16.vlgmr.msrb.gmra.mxu2 %v2520_v4 }
 0x2ad   :  { %v2517_v26 = vpop.f32.mrf.mxu1 }
 0x32f   :  { %v2598_v27 = vpop.f32.mrf.mxu2 }
 0x330   :  { %v2599_v15 = vadd.f32 %v4197_v31, %v2598_v27 }
 0x332   :  { %2602 = vst [vmem:[#allocation13] sm:$0xff] %v2599_v15 }
 0x333   :  { %2613 = dma.vmem_to_hbm [thread:$0]  %s2609_s23, 128, %s2611_s26, [#allocation4]  }
 0x337   :  { %v2600_v28 = vpop.f32.mrf.mxu2 }
 0x338   :  { %4374 = dma.done.wait [#allocation4], 128  }
 0x339   :  { %4375 = vsyncadd [#allocation4], 4294967168 }
 0x33a   :  { %2618 = vsyncpa [#allocation3], 1 }
 0x33b   :  { %2619 = vsyncpa [#allocation6], 1 }
 0x33c   :  { %2620 = vsyncpa [#allocation9], 1 }
 0x33d   :  { %2621 = vsyncpa [#allocation12], 1 }
 0x33e   :  { %2622 = vsyncpa [#allocation4], 1 }

</bundles_post_ra>
